<compile_context>
chip_gen: v5e
topology: v5e:2x2
jax: 0.10.0
libtpu: 0.0.40
codegen_flags: <defaults>
</compile_context>

<pallas_src>
import numpy as np

import jax
import jax.numpy as jnp
from jax import lax
from jax.experimental import pallas as pl
from jax.experimental.pallas import tpu as pltpu


# ------------------------------ fused kernel -------------------------------

def _fused_cnn_kernel(p1_ref, w1_ref, b1_ref, w2_ref, b2_ref,
                      wf1_ref, bf1_ref, wf2_ref, bf2_ref, out_ref):
    nt = p1_ref.shape[1]                       # samples in this batch tile

    # ---- stage 1: conv1 + maxpool(2) + relu --------------------------------
    # p1 rows ordered (i, j, n); columns are the fat 2x2-block patch (64).
    p1 = p1_ref[...].reshape(36 * nt, 64)
    r1 = jnp.dot(p1, w1_ref[...],
                 preferred_element_type=jnp.float32)          # (36nt, 256)
    # columns = (pool phase)*64 + (parity plane g)*16 + out channel (16-padded)
    pooled1 = jnp.maximum(jnp.maximum(r1[:, 0:64], r1[:, 64:128]),
                          jnp.maximum(r1[:, 128:192], r1[:, 192:256]))
    o1 = jnp.maximum(pooled1 + b1_ref[...], 0.0)              # (36nt, 64)
    o1_4d = o1.reshape(6, 6, nt, 64)                          # [i, j, n, (g,c16)]

    # ---- stage 2: conv2 + dropout + maxpool(2) + relu ----------------------
    # TODO(synk): Dropout2d is treated as identity (inference/eval semantics).
    # Accumulated skinny matmuls over the 3x3 polyphase taps (no wide concat).
    w2 = w2_ref[...]                                          # (576, 128)
    r2 = None
    for ay in range(3):
        for ax in range(3):
            piece = o1_4d[ay:ay + 4, ax:ax + 4, :, :].reshape(16 * nt, 64)
            k = (ay * 3 + ax) * 64
            d = jnp.dot(piece, w2[k:k + 64, :],
                        preferred_element_type=jnp.float32)   # (16nt, 128)
            r2 = d if r2 is None else r2 + d
    # columns = (pool phase)*32 + out channel (32-padded)
    pooled2 = jnp.maximum(jnp.maximum(r2[:, 0:32], r2[:, 32:64]),
                          jnp.maximum(r2[:, 64:96], r2[:, 96:128]))
    o2 = jnp.maximum(pooled2 + b2_ref[...], 0.0)              # (16nt, 32), rows (p,q,n)

    # ---- flatten (n, p, q, c32) -> fc1 -> relu -> fc2 -> log_softmax -------
    feat = o2.reshape(16, nt, 32).transpose(1, 0, 2).reshape(nt, 512)
    h = jnp.maximum(
        jnp.dot(feat, wf1_ref[...], preferred_element_type=jnp.float32)
        + bf1_ref[...], 0.0)                                  # (nt, 64), 60 real
    logits = jnp.dot(h, wf2_ref[...],
                     preferred_element_type=jnp.float32) + bf2_ref[...]
    mx = jnp.max(logits, axis=-1, keepdims=True)
    s = logits - mx
    lse = jnp.log(jnp.sum(jnp.exp(s), axis=-1, keepdims=True))
    out_ref[...] = s - lse


# ----------------------------- pallas_call glue -----------------------------

def _pick_block_n(n):
    for cand in (8, 16, 32):
        if n <= cand:
            return cand
    return 32


def _fused_call(p1, prepped, npad, block_n):
    w1b, b1p, w2b, b2p, wf1p, bf1p, wf2p, bf2p = prepped
    grid = (npad // block_n,)

    def rep(arr):  # weights/biases: same block at every grid step (stay resident)
        return pl.BlockSpec(arr.shape, lambda i: (0,) * arr.ndim)

    return pl.pallas_call(
        _fused_cnn_kernel,
        out_shape=jax.ShapeDtypeStruct((npad, 10), jnp.float32),
        grid=grid,
        in_specs=[pl.BlockSpec((36, block_n, 64), lambda i: (0, i, 0)),
                  rep(w1b), rep(b1p), rep(w2b), rep(b2p),
                  rep(wf1p), rep(bf1p), rep(wf2p), rep(bf2p)],
        out_specs=pl.BlockSpec((block_n, 10), lambda i: (i, 0)),
        compiler_params=pltpu.CompilerParams(
            dimension_semantics=("parallel",)),
    )(p1, w1b, b1p, w2b, b2p, wf1p, bf1p, wf2p, bf2p)


def cnn_forward(x_nchw, prepped):
    """Forward pass: x (N, 1, 28, 28) NCHW -> log-probs (N, 10)."""
    N = x_nchw.shape[0]
    block_n = _pick_block_n(N)
    npad = -(-N // block_n) * block_n
    x = x_nchw.reshape(N, 28, 28).astype(jnp.float32)
    if npad != N:
        x = jnp.pad(x, ((0, npad - N), (0, 0), (0, 0)))

    # Host-side polyphase im2col for stage 1 (pure layout, XLA-fused):
    #   p1[i*6+j, n, 16*(2*ay+ax) + 4*a + b] = x[n, 4*(i+ay)+a, 4*(j+ax)+b]
    xr = x.reshape(npad, 7, 4, 7, 4)                       # [n, I, a, J, b]
    pieces = [xr[:, ay:ay + 6, :, ax:ax + 6, :]
              for ay in range(2) for ax in range(2)]       # 4 x (n,6,4,6,4)
    p1 = jnp.stack(pieces, axis=0)                         # [g, n, i, a, j, b]
    p1 = p1.transpose(2, 4, 1, 0, 3, 5)                    # [i, j, n, g, a, b]
    p1 = p1.reshape(36, npad, 64)

    out = _fused_call(p1, prepped, npad, block_n)
    return out[:N]


# --------------------------- one-time weight prep ---------------------------

def prepare_params(params):
    """Builds the scattered ('fat') conv weights that fold pool phases /
    polyphase planes into the matmuls (with 16/32-lane channel padding), and
    permutes fc1's rows to the kernel's (p, q, c) flatten order."""
    w1, b1, w2, b2, wf1, bf1, wf2, bf2 = [np.asarray(p, np.float32)
                                          for p in params]

    # conv1 fat weight: rows = P1 patch cols (2x2 block, 4x4 pixel) -> 64;
    # cols = (pool phase 2*qy+qx)*64 + (plane g=2*ry+rx)*16 + out ch (10 real).
    w1k = w1.reshape(10, 5, 5)
    w1_big = np.zeros((64, 256), np.float32)
    for ry in range(2):
        for rx in range(2):
            g = 2 * ry + rx
            for qy in range(2):
                for qx in range(2):
                    ph = 2 * qy + qx
                    for dy in range(5):
                        for dx in range(5):
                            sy = 2 * ry + qy + dy
                            sx = 2 * rx + qx + dx
                            row = (16 * (2 * (sy // 4) + sx // 4)
                                   + 4 * (sy % 4) + (sx % 4))
                            c0 = ph * 64 + g * 16
                            w1_big[row, c0:c0 + 10] += w1k[:, dy, dx]

    b1p = np.zeros((1, 64), np.float32)
    for g in range(4):
        b1p[0, g * 16:g * 16 + 10] = b1

    # conv2 fat weight: rows = ((ay*3+ax)*4 + g)*16 + ci (10 real of 16);
    # cols = (pool phase 2*qy+qx)*32 + out ch (20 real of 32).
    w2_big = np.zeros((576, 128), np.float32)
    for qy in range(2):
        for qx in range(2):
            ph = 2 * qy + qx
            for dy in range(5):
                for dx in range(5):
                    ry, ay = (qy + dy) % 2, (qy + dy) // 2
                    rx, ax = (qx + dx) % 2, (qx + dx) // 2
                    base = ((ay * 3 + ax) * 4 + 2 * ry + rx) * 16
                    for ci in range(10):
                        w2_big[base + ci, ph * 32:ph * 32 + 20] += w2[:, ci, dy, dx]

    b2p = np.zeros((1, 32), np.float32)
    b2p[0, :20] = b2

    # fc1: permute rows so the kernel's (p, q, c32) flatten matches torch's
    # NCHW view(-1,320) == (c, p, q) flatten; pad 320->512 rows / 60->64 cols
    # with zeros (padded activation lanes are exactly zero, so this is exact).
    wf1p = np.zeros((512, 64), np.float32)
    for c in range(20):
        for p in range(4):
            for q in range(4):
                wf1p[(p * 4 + q) * 32 + c, :60] = wf1[c * 16 + p * 4 + q, :]
    bf1p = np.zeros((1, 64), np.float32)
    bf1p[0, :60] = bf1

    wf2p = np.zeros((64, 10), np.float32)
    wf2p[:60, :] = wf2
    bf2p = bf2.reshape(1, 10)

    return tuple(jnp.asarray(a) for a in
                 (w1_big, b1p, w2_big, b2p, wf1p, bf1p, wf2p, bf2p))


# ------------------------- reference (plain JAX) ----------------------------

def cnn_forward_ref(x, params):
    w1, b1, w2, b2, wf1, bf1, wf2, bf2 = params
    dn = ('NCHW', 'OIHW', 'NCHW')
    o = lax.conv_general_dilated(x, w1, (1, 1), 'VALID', dimension_numbers=dn)
    o = o + b1[None, :, None, None]
    o = lax.reduce_window(o, -jnp.inf, lax.max, (1, 1, 2, 2), (1, 1, 2, 2), 'VALID')
    o = jnp.maximum(o, 0.0)
    o = lax.conv_general_dilated(o, w2, (1, 1), 'VALID', dimension_numbers=dn)
    o = o + b2[None, :, None, None]
    o = lax.reduce_window(o, -jnp.inf, lax.max, (1, 1, 2, 2), (1, 1, 2, 2), 'VALID')
    o = jnp.maximum(o, 0.0)
    o = o.reshape(o.shape[0], 320)
    o = jnp.maximum(o @ wf1 + bf1, 0.0)
    o = o @ wf2 + bf2
    return jax.nn.log_softmax(o, axis=1)


# ------------------------------- params init --------------------------------

def init_params(key):
    def uniform(k, shape, fan_in):
        bound = 1.0 / (float(fan_in) ** 0.5)
        return jax.random.uniform(k, shape, jnp.float32, -bound, bound)

    ks = jax.random.split(key, 8)
    w1 = uniform(ks[0], (10, 1, 5, 5), 25)     # conv1 weight (OIHW)
    b1 = uniform(ks[1], (10,), 25)
    w2 = uniform(ks[2], (20, 10, 5, 5), 250)   # conv2 weight (OIHW)
    b2 = uniform(ks[3], (20,), 250)
    wf1 = uniform(ks[4], (320, 60), 320)       # fc1 weight stored as (in, out)
    bf1 = uniform(ks[5], (60,), 320)
    wf2 = uniform(ks[6], (60, 10), 60)         # fc2 weight stored as (in, out)
    bf2 = uniform(ks[7], (10,), 60)
    return (w1, b1, w2, b2, wf1, bf1, wf2, bf2)


if __name__ == "__main__":
    key = jax.random.PRNGKey(0)
    pkey, xkey = jax.random.split(key)
    params = init_params(pkey)
    x = jax.random.normal(xkey, (2, 1, 28, 28), jnp.float32)

    prepped = prepare_params(params)            # one-time weight prep
    fwd = jax.jit(cnn_forward)

    out = jax.block_until_ready(fwd(x, prepped))
    ref = jax.block_until_ready(cnn_forward_ref(x, params))

    assert out.shape == (2, 10), out.shape
    assert jnp.allclose(out, ref, atol=1e-4, rtol=1e-4), \
        float(jnp.max(jnp.abs(out - ref)))
    print("KERNEL_OK")
</pallas_src>

<mosaic_0001>
module attributes {stable_mosaic.version = 11 : i64} {
  func.func @_fused_cnn_kernel(%arg0: i32, %arg1: memref<36x8x64xf32, #tpu.memory_space<vmem>>, %arg2: memref<64x256xf32, #tpu.memory_space<vmem>>, %arg3: memref<1x64xf32, #tpu.memory_space<vmem>>, %arg4: memref<576x128xf32, #tpu.memory_space<vmem>>, %arg5: memref<1x32xf32, #tpu.memory_space<vmem>>, %arg6: memref<512x64xf32, #tpu.memory_space<vmem>>, %arg7: memref<1x64xf32, #tpu.memory_space<vmem>>, %arg8: memref<64x10xf32, #tpu.memory_space<vmem>>, %arg9: memref<1x10xf32, #tpu.memory_space<vmem>>, %arg10: memref<8x10xf32, #tpu.memory_space<vmem>>) attributes {dimension_semantics = [#tpu.dimension_semantics<parallel>], iteration_bounds = array<i64: 1>, scalar_prefetch = 0 : i64, scratch_operands = 0 : i64, tpu.core_type = #tpu.core_type<tc>, window_params = [{transform_indices = @transform_0, window_bounds = array<i64: 36, 8, 64>}, {pipeline_mode = #tpu.pipeline_mode<synchronous>, transform_indices = @transform_1, window_bounds = array<i64: 64, 256>}, {pipeline_mode = #tpu.pipeline_mode<synchronous>, transform_indices = @transform_2, window_bounds = array<i64: 1, 64>}, {pipeline_mode = #tpu.pipeline_mode<synchronous>, transform_indices = @transform_3, window_bounds = array<i64: 576, 128>}, {pipeline_mode = #tpu.pipeline_mode<synchronous>, transform_indices = @transform_4, window_bounds = array<i64: 1, 32>}, {pipeline_mode = #tpu.pipeline_mode<synchronous>, transform_indices = @transform_5, window_bounds = array<i64: 512, 64>}, {pipeline_mode = #tpu.pipeline_mode<synchronous>, transform_indices = @transform_6, window_bounds = array<i64: 1, 64>}, {pipeline_mode = #tpu.pipeline_mode<synchronous>, transform_indices = @transform_7, window_bounds = array<i64: 64, 10>}, {pipeline_mode = #tpu.pipeline_mode<synchronous>, transform_indices = @transform_8, window_bounds = array<i64: 1, 10>}, {transform_indices = @transform_9, window_bounds = array<i64: 8, 10>}]} {
    %c0 = arith.constant 0 : index
    %c0_0 = arith.constant 0 : index
    %c0_1 = arith.constant 0 : index
    %0 = vector.load %arg1[%c0, %c0_0, %c0_1] : memref<36x8x64xf32, #tpu.memory_space<vmem>>, vector<36x8x64xf32>
    %1 = vector.shape_cast %0 : vector<36x8x64xf32> to vector<288x64xf32>
    %c0_2 = arith.constant 0 : index
    %c0_3 = arith.constant 0 : index
    %2 = vector.load %arg2[%c0_2, %c0_3] : memref<64x256xf32, #tpu.memory_space<vmem>>, vector<64x256xf32>
    %cst = arith.constant dense<0.000000e+00> : vector<288x256xf32>
    %3 = tpu.matmul %1, %2, %cst {dimension_numbers = #tpu.dot_dimension_numbers<[1], [0], [0], [1], [0, 0, 1, 1], [], []>} : vector<288x64xf32>, vector<64x256xf32>, vector<288x256xf32> -> vector<288x256xf32>
    %4 = vector.extract_strided_slice %3 {offsets = [0, 0], sizes = [288, 64], strides = [1, 1]} : vector<288x256xf32> to vector<288x64xf32>
    %5 = vector.extract_strided_slice %3 {offsets = [0, 64], sizes = [288, 64], strides = [1, 1]} : vector<288x256xf32> to vector<288x64xf32>
    %6 = arith.maximumf %4, %5 : vector<288x64xf32>
    %7 = vector.extract_strided_slice %3 {offsets = [0, 128], sizes = [288, 64], strides = [1, 1]} : vector<288x256xf32> to vector<288x64xf32>
    %8 = vector.extract_strided_slice %3 {offsets = [0, 192], sizes = [288, 64], strides = [1, 1]} : vector<288x256xf32> to vector<288x64xf32>
    %9 = arith.maximumf %7, %8 : vector<288x64xf32>
    %10 = arith.maximumf %6, %9 : vector<288x64xf32>
    %c0_4 = arith.constant 0 : index
    %c0_5 = arith.constant 0 : index
    %11 = vector.load %arg3[%c0_4, %c0_5] : memref<1x64xf32, #tpu.memory_space<vmem>>, vector<1x64xf32>
    %12 = vector.broadcast %11 : vector<1x64xf32> to vector<288x64xf32>
    %13 = arith.addf %10, %12 : vector<288x64xf32>
    %cst_6 = arith.constant 0.000000e+00 : f32
    %14 = vector.broadcast %cst_6 : f32 to vector<288x64xf32>
    %15 = arith.maximumf %13, %14 : vector<288x64xf32>
    %16 = vector.shape_cast %15 : vector<288x64xf32> to vector<6x6x8x64xf32>
    %c0_7 = arith.constant 0 : index
    %c0_8 = arith.constant 0 : index
    %17 = vector.load %arg4[%c0_7, %c0_8] : memref<576x128xf32, #tpu.memory_space<vmem>>, vector<576x128xf32>
    %18 = vector.extract_strided_slice %16 {offsets = [0, 0, 0, 0], sizes = [4, 4, 8, 64], strides = [1, 1, 1, 1]} : vector<6x6x8x64xf32> to vector<4x4x8x64xf32>
    %19 = vector.shape_cast %18 : vector<4x4x8x64xf32> to vector<128x64xf32>
    %20 = vector.extract_strided_slice %17 {offsets = [0, 0], sizes = [64, 128], strides = [1, 1]} : vector<576x128xf32> to vector<64x128xf32>
    %cst_9 = arith.constant dense<0.000000e+00> : vector<128x128xf32>
    %21 = tpu.matmul %19, %20, %cst_9 {dimension_numbers = #tpu.dot_dimension_numbers<[1], [0], [0], [1], [0, 0, 1, 1], [], []>} : vector<128x64xf32>, vector<64x128xf32>, vector<128x128xf32> -> vector<128x128xf32>
    %22 = vector.extract_strided_slice %16 {offsets = [0, 1, 0, 0], sizes = [4, 4, 8, 64], strides = [1, 1, 1, 1]} : vector<6x6x8x64xf32> to vector<4x4x8x64xf32>
    %23 = vector.shape_cast %22 : vector<4x4x8x64xf32> to vector<128x64xf32>
    %24 = vector.extract_strided_slice %17 {offsets = [64, 0], sizes = [64, 128], strides = [1, 1]} : vector<576x128xf32> to vector<64x128xf32>
    %cst_10 = arith.constant dense<0.000000e+00> : vector<128x128xf32>
    %25 = tpu.matmul %23, %24, %cst_10 {dimension_numbers = #tpu.dot_dimension_numbers<[1], [0], [0], [1], [0, 0, 1, 1], [], []>} : vector<128x64xf32>, vector<64x128xf32>, vector<128x128xf32> -> vector<128x128xf32>
    %26 = arith.addf %21, %25 : vector<128x128xf32>
    %27 = vector.extract_strided_slice %16 {offsets = [0, 2, 0, 0], sizes = [4, 4, 8, 64], strides = [1, 1, 1, 1]} : vector<6x6x8x64xf32> to vector<4x4x8x64xf32>
    %28 = vector.shape_cast %27 : vector<4x4x8x64xf32> to vector<128x64xf32>
    %29 = vector.extract_strided_slice %17 {offsets = [128, 0], sizes = [64, 128], strides = [1, 1]} : vector<576x128xf32> to vector<64x128xf32>
    %cst_11 = arith.constant dense<0.000000e+00> : vector<128x128xf32>
    %30 = tpu.matmul %28, %29, %cst_11 {dimension_numbers = #tpu.dot_dimension_numbers<[1], [0], [0], [1], [0, 0, 1, 1], [], []>} : vector<128x64xf32>, vector<64x128xf32>, vector<128x128xf32> -> vector<128x128xf32>
    %31 = arith.addf %26, %30 : vector<128x128xf32>
    %32 = vector.extract_strided_slice %16 {offsets = [1, 0, 0, 0], sizes = [4, 4, 8, 64], strides = [1, 1, 1, 1]} : vector<6x6x8x64xf32> to vector<4x4x8x64xf32>
    %33 = vector.shape_cast %32 : vector<4x4x8x64xf32> to vector<128x64xf32>
    %34 = vector.extract_strided_slice %17 {offsets = [192, 0], sizes = [64, 128], strides = [1, 1]} : vector<576x128xf32> to vector<64x128xf32>
    %cst_12 = arith.constant dense<0.000000e+00> : vector<128x128xf32>
    %35 = tpu.matmul %33, %34, %cst_12 {dimension_numbers = #tpu.dot_dimension_numbers<[1], [0], [0], [1], [0, 0, 1, 1], [], []>} : vector<128x64xf32>, vector<64x128xf32>, vector<128x128xf32> -> vector<128x128xf32>
    %36 = arith.addf %31, %35 : vector<128x128xf32>
    %37 = vector.extract_strided_slice %16 {offsets = [1, 1, 0, 0], sizes = [4, 4, 8, 64], strides = [1, 1, 1, 1]} : vector<6x6x8x64xf32> to vector<4x4x8x64xf32>
    %38 = vector.shape_cast %37 : vector<4x4x8x64xf32> to vector<128x64xf32>
    %39 = vector.extract_strided_slice %17 {offsets = [256, 0], sizes = [64, 128], strides = [1, 1]} : vector<576x128xf32> to vector<64x128xf32>
    %cst_13 = arith.constant dense<0.000000e+00> : vector<128x128xf32>
    %40 = tpu.matmul %38, %39, %cst_13 {dimension_numbers = #tpu.dot_dimension_numbers<[1], [0], [0], [1], [0, 0, 1, 1], [], []>} : vector<128x64xf32>, vector<64x128xf32>, vector<128x128xf32> -> vector<128x128xf32>
    %41 = arith.addf %36, %40 : vector<128x128xf32>
    %42 = vector.extract_strided_slice %16 {offsets = [1, 2, 0, 0], sizes = [4, 4, 8, 64], strides = [1, 1, 1, 1]} : vector<6x6x8x64xf32> to vector<4x4x8x64xf32>
    %43 = vector.shape_cast %42 : vector<4x4x8x64xf32> to vector<128x64xf32>
    %44 = vector.extract_strided_slice %17 {offsets = [320, 0], sizes = [64, 128], strides = [1, 1]} : vector<576x128xf32> to vector<64x128xf32>
    %cst_14 = arith.constant dense<0.000000e+00> : vector<128x128xf32>
    %45 = tpu.matmul %43, %44, %cst_14 {dimension_numbers = #tpu.dot_dimension_numbers<[1], [0], [0], [1], [0, 0, 1, 1], [], []>} : vector<128x64xf32>, vector<64x128xf32>, vector<128x128xf32> -> vector<128x128xf32>
    %46 = arith.addf %41, %45 : vector<128x128xf32>
    %47 = vector.extract_strided_slice %16 {offsets = [2, 0, 0, 0], sizes = [4, 4, 8, 64], strides = [1, 1, 1, 1]} : vector<6x6x8x64xf32> to vector<4x4x8x64xf32>
    %48 = vector.shape_cast %47 : vector<4x4x8x64xf32> to vector<128x64xf32>
    %49 = vector.extract_strided_slice %17 {offsets = [384, 0], sizes = [64, 128], strides = [1, 1]} : vector<576x128xf32> to vector<64x128xf32>
    %cst_15 = arith.constant dense<0.000000e+00> : vector<128x128xf32>
    %50 = tpu.matmul %48, %49, %cst_15 {dimension_numbers = #tpu.dot_dimension_numbers<[1], [0], [0], [1], [0, 0, 1, 1], [], []>} : vector<128x64xf32>, vector<64x128xf32>, vector<128x128xf32> -> vector<128x128xf32>
    %51 = arith.addf %46, %50 : vector<128x128xf32>
    %52 = vector.extract_strided_slice %16 {offsets = [2, 1, 0, 0], sizes = [4, 4, 8, 64], strides = [1, 1, 1, 1]} : vector<6x6x8x64xf32> to vector<4x4x8x64xf32>
    %53 = vector.shape_cast %52 : vector<4x4x8x64xf32> to vector<128x64xf32>
    %54 = vector.extract_strided_slice %17 {offsets = [448, 0], sizes = [64, 128], strides = [1, 1]} : vector<576x128xf32> to vector<64x128xf32>
    %cst_16 = arith.constant dense<0.000000e+00> : vector<128x128xf32>
    %55 = tpu.matmul %53, %54, %cst_16 {dimension_numbers = #tpu.dot_dimension_numbers<[1], [0], [0], [1], [0, 0, 1, 1], [], []>} : vector<128x64xf32>, vector<64x128xf32>, vector<128x128xf32> -> vector<128x128xf32>
    %56 = arith.addf %51, %55 : vector<128x128xf32>
    %57 = vector.extract_strided_slice %16 {offsets = [2, 2, 0, 0], sizes = [4, 4, 8, 64], strides = [1, 1, 1, 1]} : vector<6x6x8x64xf32> to vector<4x4x8x64xf32>
    %58 = vector.shape_cast %57 : vector<4x4x8x64xf32> to vector<128x64xf32>
    %59 = vector.extract_strided_slice %17 {offsets = [512, 0], sizes = [64, 128], strides = [1, 1]} : vector<576x128xf32> to vector<64x128xf32>
    %cst_17 = arith.constant dense<0.000000e+00> : vector<128x128xf32>
    %60 = tpu.matmul %58, %59, %cst_17 {dimension_numbers = #tpu.dot_dimension_numbers<[1], [0], [0], [1], [0, 0, 1, 1], [], []>} : vector<128x64xf32>, vector<64x128xf32>, vector<128x128xf32> -> vector<128x128xf32>
    %61 = arith.addf %56, %60 : vector<128x128xf32>
    %62 = vector.extract_strided_slice %61 {offsets = [0, 0], sizes = [128, 32], strides = [1, 1]} : vector<128x128xf32> to vector<128x32xf32>
    %63 = vector.extract_strided_slice %61 {offsets = [0, 32], sizes = [128, 32], strides = [1, 1]} : vector<128x128xf32> to vector<128x32xf32>
    %64 = arith.maximumf %62, %63 : vector<128x32xf32>
    %65 = vector.extract_strided_slice %61 {offsets = [0, 64], sizes = [128, 32], strides = [1, 1]} : vector<128x128xf32> to vector<128x32xf32>
    %66 = vector.extract_strided_slice %61 {offsets = [0, 96], sizes = [128, 32], strides = [1, 1]} : vector<128x128xf32> to vector<128x32xf32>
    %67 = arith.maximumf %65, %66 : vector<128x32xf32>
    %68 = arith.maximumf %64, %67 : vector<128x32xf32>
    %c0_18 = arith.constant 0 : index
    %c0_19 = arith.constant 0 : index
    %69 = vector.load %arg5[%c0_18, %c0_19] : memref<1x32xf32, #tpu.memory_space<vmem>>, vector<1x32xf32>
    %70 = vector.broadcast %69 : vector<1x32xf32> to vector<128x32xf32>
    %71 = arith.addf %68, %70 : vector<128x32xf32>
    %cst_20 = arith.constant 0.000000e+00 : f32
    %72 = vector.broadcast %cst_20 : f32 to vector<128x32xf32>
    %73 = arith.maximumf %71, %72 : vector<128x32xf32>
    %74 = vector.shape_cast %73 : vector<128x32xf32> to vector<16x8x32xf32>
    %75 = tpu.transpose %74, [1, 0, 2] : vector<16x8x32xf32> -> vector<8x16x32xf32>
    %76 = vector.shape_cast %75 : vector<8x16x32xf32> to vector<8x512xf32>
    %c0_21 = arith.constant 0 : index
    %c0_22 = arith.constant 0 : index
    %77 = vector.load %arg6[%c0_21, %c0_22] : memref<512x64xf32, #tpu.memory_space<vmem>>, vector<512x64xf32>
    %cst_23 = arith.constant dense<0.000000e+00> : vector<8x64xf32>
    %78 = tpu.matmul %76, %77, %cst_23 {dimension_numbers = #tpu.dot_dimension_numbers<[1], [0], [0], [1], [0, 0, 1, 1], [], []>} : vector<8x512xf32>, vector<512x64xf32>, vector<8x64xf32> -> vector<8x64xf32>
    %c0_24 = arith.constant 0 : index
    %c0_25 = arith.constant 0 : index
    %79 = vector.load %arg7[%c0_24, %c0_25] : memref<1x64xf32, #tpu.memory_space<vmem>>, vector<1x64xf32>
    %80 = vector.broadcast %79 : vector<1x64xf32> to vector<8x64xf32>
    %81 = arith.addf %78, %80 : vector<8x64xf32>
    %cst_26 = arith.constant 0.000000e+00 : f32
    %82 = vector.broadcast %cst_26 : f32 to vector<8x64xf32>
    %83 = arith.maximumf %81, %82 : vector<8x64xf32>
    %c0_27 = arith.constant 0 : index
    %c0_28 = arith.constant 0 : index
    %84 = vector.load %arg8[%c0_27, %c0_28] : memref<64x10xf32, #tpu.memory_space<vmem>>, vector<64x10xf32>
    %cst_29 = arith.constant dense<0.000000e+00> : vector<8x10xf32>
    %85 = tpu.matmul %83, %84, %cst_29 {dimension_numbers = #tpu.dot_dimension_numbers<[1], [0], [0], [1], [0, 0, 1, 1], [], []>} : vector<8x64xf32>, vector<64x10xf32>, vector<8x10xf32> -> vector<8x10xf32>
    %c0_30 = arith.constant 0 : index
    %c0_31 = arith.constant 0 : index
    %86 = vector.load %arg9[%c0_30, %c0_31] : memref<1x10xf32, #tpu.memory_space<vmem>>, vector<1x10xf32>
    %87 = vector.broadcast %86 : vector<1x10xf32> to vector<8x10xf32>
    %88 = arith.addf %85, %87 : vector<8x10xf32>
    %cst_32 = arith.constant dense<0xFF800000> : vector<8xf32>
    %89 = vector.multi_reduction <maximumf>, %88, %cst_32 [1] : vector<8x10xf32> to vector<8xf32>
    %90 = vector.shape_cast %89 : vector<8xf32> to vector<8x1xf32>
    %91 = vector.broadcast %90 : vector<8x1xf32> to vector<8x10xf32>
    %92 = arith.subf %88, %91 : vector<8x10xf32>
    %93 = math.exp %92 : vector<8x10xf32>
    %cst_33 = arith.constant dense<0.000000e+00> : vector<8xf32>
    %94 = vector.multi_reduction <add>, %93, %cst_33 [1] : vector<8x10xf32> to vector<8xf32>
    %95 = vector.shape_cast %94 : vector<8xf32> to vector<8x1xf32>
    %96 = math.log %95 : vector<8x1xf32>
    %97 = vector.broadcast %96 : vector<8x1xf32> to vector<8x10xf32>
    %98 = arith.subf %92, %97 : vector<8x10xf32>
    %c0_34 = arith.constant 0 : index
    %c0_35 = arith.constant 0 : index
    %99 = vector.load %arg10[%c0_34, %c0_35] : memref<8x10xf32, #tpu.memory_space<vmem>>, vector<8x10xf32>
    tpu.vector_store %arg10[%c0_34, %c0_35], %98 {strides = array<i32>} : memref<8x10xf32, #tpu.memory_space<vmem>>, vector<8x10xf32>,
    return
  }
  func.func @transform_0(%arg0: i32) -> (i32, i32, i32) {
    %c0_i32 = arith.constant 0 : i32
    %c0_i32_0 = arith.constant 0 : i32
    %c0_i32_1 = arith.constant 0 : i32
    return %c0_i32, %arg0, %c0_i32_0 : i32, i32, i32
  }
  func.func @transform_1(%arg0: i32) -> (i32, i32) {
    %c0_i32 = arith.constant 0 : i32
    %c0_i32_0 = arith.constant 0 : i32
    %c0_i32_1 = arith.constant 0 : i32
    return %c0_i32, %c0_i32_0 : i32, i32
  }
  func.func @transform_2(%arg0: i32) -> (i32, i32) {
    %c0_i32 = arith.constant 0 : i32
    %c0_i32_0 = arith.constant 0 : i32
    %c0_i32_1 = arith.constant 0 : i32
    return %c0_i32, %c0_i32_0 : i32, i32
  }
  func.func @transform_3(%arg0: i32) -> (i32, i32) {
    %c0_i32 = arith.constant 0 : i32
    %c0_i32_0 = arith.constant 0 : i32
    %c0_i32_1 = arith.constant 0 : i32
    return %c0_i32, %c0_i32_0 : i32, i32
  }
  func.func @transform_4(%arg0: i32) -> (i32, i32) {
    %c0_i32 = arith.constant 0 : i32
    %c0_i32_0 = arith.constant 0 : i32
    %c0_i32_1 = arith.constant 0 : i32
    return %c0_i32, %c0_i32_0 : i32, i32
  }
  func.func @transform_5(%arg0: i32) -> (i32, i32) {
    %c0_i32 = arith.constant 0 : i32
    %c0_i32_0 = arith.constant 0 : i32
    %c0_i32_1 = arith.constant 0 : i32
    return %c0_i32, %c0_i32_0 : i32, i32
  }
  func.func @transform_6(%arg0: i32) -> (i32, i32) {
    %c0_i32 = arith.constant 0 : i32
    %c0_i32_0 = arith.constant 0 : i32
    %c0_i32_1 = arith.constant 0 : i32
    return %c0_i32, %c0_i32_0 : i32, i32
  }
  func.func @transform_7(%arg0: i32) -> (i32, i32) {
    %c0_i32 = arith.constant 0 : i32
    %c0_i32_0 = arith.constant 0 : i32
    %c0_i32_1 = arith.constant 0 : i32
    return %c0_i32, %c0_i32_0 : i32, i32
  }
  func.func @transform_8(%arg0: i32) -> (i32, i32) {
    %c0_i32 = arith.constant 0 : i32
    %c0_i32_0 = arith.constant 0 : i32
    %c0_i32_1 = arith.constant 0 : i32
    return %c0_i32, %c0_i32_0 : i32, i32
  }
  func.func @transform_9(%arg0: i32) -> (i32, i32) {
    %c0_i32 = arith.constant 0 : i32
    %c0_i32_0 = arith.constant 0 : i32
    return %arg0, %c0_i32 : i32, i32
  }
}

</mosaic_0001>

<bundles_post_ra>
// kernel: cnn_forward.1
= control target key start
LH: loop header
LB: loop body
LE: loop exit
PB: predicated region body
PF: predicated region fallthrough
CT: control target
= control target key end

     0   :  { %vm84_vm0 = vcmask 523264   ;;  %s2978_s27 = smov 64   ;;  %vm1989_vm1 = vcmask 1047556   ;;  %vm2485_vm2 = vcmask 261120   ;;  %vm2488_vm3 = vcmask 785408   ;;  %s5026_s1 = inlined_call_operand.vmem [shape: f32[64,256], index: 1, kind: input, shape index: {}]   ;;  %s5027_s0 = inlined_call_operand.vmem [shape: f32[36,8,64], index: 0, kind: input, shape index: {}]   ;;  %s5028_s2 = inlined_call_operand.vmem [shape: f32[1,64], index: 2, kind: input, shape index: {}]   ;;  %s5029_s3 = inlined_call_operand.vmem [shape: f32[576,128], index: 3, kind: input, shape index: {}]   ;;  %s5030_s4 = inlined_call_operand.vmem [shape: f32[1,32], index: 4, kind: input, shape index: {}]   ;;  %s5031_s5 = inlined_call_operand.vmem [shape: f32[512,64], index: 5, kind: input, shape index: {}]   ;;  %s5032_s6 = inlined_call_operand.vmem [shape: f32[1,64], index: 6, kind: input, shape index: {}]   ;;  %s5033_s7 = inlined_call_operand.vmem [shape: f32[64,10], index: 7, kind: input, shape index: {}]   ;;  %s5034_s8 = inlined_call_operand.vmem [shape: f32[1,10], index: 8, kind: input, shape index: {}]   ;;  %s5035_s9 = inlined_call_operand.vmem [shape: f32[8,10], index: 9, kind: output, shape index: {}]  }
   0x1   :  { %v82_v0 = vld [vmem:[%s5026_s1 + $0x70] sm:$0xff]  ;;  %v83_v1 = vld [vmem:[%s5026_s1 + $0x78] sm:$0xff]  ;;  %v80_v2 = vld [vmem:[%s5026_s1 + $0x60] sm:$0xff]  ;;  %vm2683_vm4 = vcmask 80896  }
   0x2   :  { %201 = vmatpush.msra.mxu0 %v82_v0  ;;  %326 = vmatpush.msra.mxu1 %v83_v1  ;;  %v81_v3 = vld [vmem:[%s5026_s1 + $0x68] sm:$0xff]  ;;  %v78_v4 = vld [vmem:[%s5026_s1 + $0x50] sm:$0xff]  ;;  %v79_v5 = vld [vmem:[%s5026_s1 + $0x58] sm:$0xff] }
   0x3   :  { %2918 = vmatpush.msra.mxu3 %v83_v1  ;;  %v76_v6 = vld [vmem:[%s5026_s1 + $0x40] sm:$0xff]  ;;  %v77_v7 = vld [vmem:[%s5026_s1 + $0x48] sm:$0xff]  ;;  %v74_v8 = vld [vmem:[%s5026_s1 + $0x30] sm:$0xff] }
   0x4   :  { %202 = vmatpush.msra.mxu0 %v80_v2  ;;  %327 = vmatpush.msra.mxu1 %v81_v3  ;;  %v75_v9 = vld [vmem:[%s5026_s1 + $0x38] sm:$0xff]  ;;  %v72_v10 = vld [vmem:[%s5026_s1 + $0x20] sm:$0xff]  ;;  %v73_v11 = vld [vmem:[%s5026_s1 + $0x28] sm:$0xff] }
   0x5   :  { %2919 = vmatpush.msra.mxu3 %v81_v3  ;;  %v70_v12 = vld [vmem:[%s5026_s1 + $0x10] sm:$0xff]  ;;  %v71_v13 = vld [vmem:[%s5026_s1 + $0x18] sm:$0xff]  ;;  %v68_v14 = vld [vmem:[%s5026_s1] sm:$0xff] }
   0x6   :  { %203 = vmatpush.msra.mxu0 %v78_v4  ;;  %328 = vmatpush.msra.mxu1 %v79_v5  ;;  %v69_v15 = vld [vmem:[%s5026_s1 + $0x8] sm:$0xff]  ;;  %v32_v16 = vld [vmem:[%s5027_s0] sm:$0xff]  ;;  %v34_v18 = vld [vmem:[%s5027_s0 + $0x10] sm:$0xff] }
   0x7   :  { %2920 = vmatpush.msra.mxu3 %v79_v5  ;;  %v33_v17 = vld [vmem:[%s5027_s0 + $0x8] sm:$0xff]  ;;  %v35_v19 = vld [vmem:[%s5027_s0 + $0x18] sm:$0xff]  ;;  %v36_v20 = vld [vmem:[%s5027_s0 + $0x20] sm:$0xff] }
   0x8   :  { %204 = vmatpush.msra.mxu0 %v76_v6  ;;  %329 = vmatpush.msra.mxu1 %v77_v7  ;;  %v37_v21 = vld [vmem:[%s5027_s0 + $0x28] sm:$0xff]  ;;  %v38_v22 = vld [vmem:[%s5027_s0 + $0x30] sm:$0xff]  ;;  %v39_v23 = vld [vmem:[%s5027_s0 + $0x38] sm:$0xff] }
   0x9   :  { %2921 = vmatpush.msra.mxu3 %v77_v7  ;;  %v40_v24 = vld [vmem:[%s5027_s0 + $0x40] sm:$0xff]  ;;  %v41_v25 = vld [vmem:[%s5027_s0 + $0x48] sm:$0xff]  ;;  %v42_v26 = vld [vmem:[%s5027_s0 + $0x50] sm:$0xff] }
   0xa   :  { %205 = vmatpush.msra.mxu0 %v74_v8  ;;  %330 = vmatpush.msra.mxu1 %v75_v9  ;;  %v43_v27 = vld [vmem:[%s5027_s0 + $0x58] sm:$0xff]  ;;  %v44_v28 = vld [vmem:[%s5027_s0 + $0x60] sm:$0xff]  ;;  %v45_v29 = vld [vmem:[%s5027_s0 + $0x68] sm:$0xff] }
   0xb   :  { %2922 = vmatpush.msra.mxu3 %v75_v9  ;;  %v46_v30 = vld [vmem:[%s5027_s0 + $0x70] sm:$0xff]  ;;  %v47_v31 = vld [vmem:[%s5027_s0 + $0x78] sm:$0xff]  ;;  %v48_v34 = vld [vmem:[%s5027_s0 + $0x80] sm:$0xff] }
   0xc   :  { %206 = vmatpush.msra.mxu0 %v72_v10  ;;  %331 = vmatpush.msra.mxu1 %v73_v11  ;;  %v49_v37 = vld [vmem:[%s5027_s0 + $0x88] sm:$0xff]  ;;  %v50_v40 = vld [vmem:[%s5027_s0 + $0x90] sm:$0xff]  ;;  %v51_v43 = vld [vmem:[%s5027_s0 + $0x98] sm:$0xff] }
   0xd   :  { %2923 = vmatpush.msra.mxu3 %v73_v11  ;;  %v52_v46 = vld [vmem:[%s5027_s0 + $0xa0] sm:$0xff]  ;;  %v53_v49 = vld [vmem:[%s5027_s0 + $0xa8] sm:$0xff]  ;;  %v54_v52 = vld [vmem:[%s5027_s0 + $0xb0] sm:$0xff] }
   0xe   :  { %207 = vmatpush.msra.mxu0 %v70_v12  ;;  %332 = vmatpush.msra.mxu1 %v71_v13  ;;  %v55_v55 = vld [vmem:[%s5027_s0 + $0xb8] sm:$0xff]  ;;  %v56_v58 = vld [vmem:[%s5027_s0 + $0xc0] sm:$0xff]  ;;  %v57_v61 = vld [vmem:[%s5027_s0 + $0xc8] sm:$0xff] }
   0xf   :  { %2924 = vmatpush.msra.mxu3 %v71_v13  ;;  %v58_v0 = vld [vmem:[%s5027_s0 + $0xd0] sm:$0xff]  ;;  %v59_v3 = vld [vmem:[%s5027_s0 + $0xd8] sm:$0xff]  ;;  %v60_v6 = vld [vmem:[%s5027_s0 + $0xe0] sm:$0xff] }
  0x10   :  { %208 = vmatpush.msra.mxu0 %v68_v14  ;;  %333 = vmatpush.msra.mxu1 %v69_v15  ;;  %v61_v9 = vld [vmem:[%s5027_s0 + $0xe8] sm:$0xff]  ;;  %v62_v12 = vld [vmem:[%s5027_s0 + $0xf0] sm:$0xff] }
  0x11   :  { %2701 = vmatmul.msk.f32.vlgmr.msra.gmra.mxu0 %vm84_vm0, %v32_v16  ;;  %2737 = vmatmul.msk.f32.vlgmr.msra.gmra.mxu1 %vm84_vm0, %v32_v16 }
  0x12   :  { %2925 = vmatpush.msra.mxu3 %v69_v15  ;;  %v63_v15 = vld [vmem:[%s5027_s0 + $0xf8] sm:$0xff] }
  0x19   :  { %2702 = vmatmul.msk.f32.gmra.mxu0 %vm84_vm0, %v33_v17  ;;  %2738 = vmatmul.msk.f32.gmra.mxu1 %vm84_vm0, %v33_v17 }
  0x21   :  { %2703 = vmatmul.msk.f32.gmra.mxu0 %vm84_vm0, %v34_v18  ;;  %2739 = vmatmul.msk.f32.gmra.mxu1 %vm84_vm0, %v34_v18  ;;  %v64_v18 = vld [vmem:[%s5027_s0 + $0x100] sm:$0xff] }
  0x29   :  { %2704 = vmatmul.msk.f32.gmra.mxu0 %vm84_vm0, %v35_v19  ;;  %2740 = vmatmul.msk.f32.gmra.mxu1 %vm84_vm0, %v35_v19 }
  0x31   :  { %2705 = vmatmul.msk.f32.gmra.mxu0 %vm84_vm0, %v36_v20  ;;  %2741 = vmatmul.msk.f32.gmra.mxu1 %vm84_vm0, %v36_v20 }
  0x39   :  { %2706 = vmatmul.msk.f32.gmra.mxu0 %vm84_vm0, %v37_v21  ;;  %2742 = vmatmul.msk.f32.gmra.mxu1 %vm84_vm0, %v37_v21  ;;  %v65_v21 = vld [vmem:[%s5027_s0 + $0x108] sm:$0xff] }
  0x3a   :  { %2770 = vmatmul.msk.f32.vlgmr.msra.gmra.mxu3 %vm84_vm0, %v65_v21 }
  0x41   :  { %2707 = vmatmul.msk.f32.gmra.mxu0 %vm84_vm0, %v38_v22  ;;  %2743 = vmatmul.msk.f32.gmra.mxu1 %vm84_vm0, %v38_v22 }
  0x49   :  { %2708 = vmatmul.msk.f32.gmra.mxu0 %vm84_vm0, %v39_v23  ;;  %2744 = vmatmul.msk.f32.gmra.mxu1 %vm84_vm0, %v39_v23 }
  0x51   :  { %2709 = vmatmul.msk.f32.gmra.mxu0 %vm84_vm0, %v40_v24  ;;  %2745 = vmatmul.msk.f32.gmra.mxu1 %vm84_vm0, %v40_v24  ;;  %v66_v24 = vld [vmem:[%s5027_s0 + $0x110] sm:$0xff] }
  0x52   :  { %2771 = vmatmul.msk.f32.gmra.mxu3 %vm84_vm0, %v66_v24 }
  0x59   :  { %2710 = vmatmul.msk.f32.gmra.mxu0 %vm84_vm0, %v41_v25  ;;  %2746 = vmatmul.msk.f32.gmra.mxu1 %vm84_vm0, %v41_v25 }
  0x61   :  { %2711 = vmatmul.msk.f32.gmra.mxu0 %vm84_vm0, %v42_v26  ;;  %2747 = vmatmul.msk.f32.gmra.mxu1 %vm84_vm0, %v42_v26 }
  0x69   :  { %2712 = vmatmul.msk.f32.gmra.mxu0 %vm84_vm0, %v43_v27  ;;  %2748 = vmatmul.msk.f32.gmra.mxu1 %vm84_vm0, %v43_v27  ;;  %v67_v27 = vld [vmem:[%s5027_s0 + $0x118] sm:$0xff] }
  0x6a   :  { %2772 = vmatmul.msk.f32.gmra.mxu3 %vm84_vm0, %v67_v27 }
  0x71   :  { %2713 = vmatmul.msk.f32.gmra.mxu0 %vm84_vm0, %v44_v28  ;;  %2749 = vmatmul.msk.f32.gmra.mxu1 %vm84_vm0, %v44_v28 }
  0x79   :  { %2714 = vmatmul.msk.f32.gmra.mxu0 %vm84_vm0, %v45_v29  ;;  %2750 = vmatmul.msk.f32.gmra.mxu1 %vm84_vm0, %v45_v29 }
  0x81   :  { %2715 = vmatmul.msk.f32.gmra.mxu0 %vm84_vm0, %v46_v30  ;;  %2751 = vmatmul.msk.f32.gmra.mxu1 %vm84_vm0, %v46_v30  ;;  %v930_v30 = vld [vmem:[%s5029_s3 + $0x78] sm:$0xff] }
  0x82   :  { %2926 = vmatpush.msra.mxu2 %v930_v30  ;;  %1043 = vmatpush.msrb.mxu1 %v930_v30 }
  0x89   :  { %2716 = vmatmul.msk.f32.gmra.mxu0 %vm84_vm0, %v47_v31  ;;  %2752 = vmatmul.msk.f32.gmra.mxu1 %vm84_vm0, %v47_v31  ;;  %v929_v31 = vld [vmem:[%s5029_s3 + $0x70] sm:$0xff] }
  0x8a   :  { %2927 = vmatpush.msra.mxu2 %v929_v31  ;;  %1044 = vmatpush.msrb.mxu1 %v929_v31 }
  0x8e   :  { %v3161_v32 = vpop.f32.mrf.mxu0  ;;  %v3163_v33 = vpop.f32.mrf.mxu1 }
  0x91   :  { %2717 = vmatmul.msk.f32.gmra.mxu0 %vm84_vm0, %v48_v34  ;;  %2753 = vmatmul.msk.f32.gmra.mxu1 %vm84_vm0, %v48_v34  ;;  %v928_v34 = vld [vmem:[%s5029_s3 + $0x68] sm:$0xff] }
  0x92   :  { %2928 = vmatpush.msra.mxu2 %v928_v34  ;;  %1045 = vmatpush.msrb.mxu1 %v928_v34 }
  0x96   :  { %v3170_v35 = vpop.f32.mrf.mxu0  ;;  %v3172_v36 = vpop.f32.mrf.mxu1 }
  0x99   :  { %2718 = vmatmul.msk.f32.gmra.mxu0 %vm84_vm0, %v49_v37  ;;  %2754 = vmatmul.msk.f32.gmra.mxu1 %vm84_vm0, %v49_v37 }
  0x9e   :  { %v3179_v38 = vpop.f32.mrf.mxu0  ;;  %v3181_v39 = vpop.f32.mrf.mxu1 }
  0xa1   :  { %2719 = vmatmul.msk.f32.gmra.mxu0 %vm84_vm0, %v50_v40  ;;  %2755 = vmatmul.msk.f32.gmra.mxu1 %vm84_vm0, %v50_v40 }
  0xa6   :  { %v3188_v41 = vpop.f32.mrf.mxu0  ;;  %v3190_v42 = vpop.f32.mrf.mxu1 }
  0xa9   :  { %2720 = vmatmul.msk.f32.gmra.mxu0 %vm84_vm0, %v51_v43  ;;  %2756 = vmatmul.msk.f32.gmra.mxu1 %vm84_vm0, %v51_v43  ;;  %v927_v43 = vld [vmem:[%s5029_s3 + $0x60] sm:$0xff] }
  0xaa   :  { %2929 = vmatpush.msra.mxu2 %v927_v43  ;;  %1046 = vmatpush.msrb.mxu1 %v927_v43 }
  0xae   :  { %v3197_v44 = vpop.f32.mrf.mxu0  ;;  %v3199_v45 = vpop.f32.mrf.mxu1 }
  0xb1   :  { %2721 = vmatmul.msk.f32.gmra.mxu0 %vm84_vm0, %v52_v46  ;;  %2757 = vmatmul.msk.f32.gmra.mxu1 %vm84_vm0, %v52_v46  ;;  %v926_v46 = vld [vmem:[%s5029_s3 + $0x58] sm:$0xff] }
  0xb2   :  { %2930 = vmatpush.msra.mxu2 %v926_v46  ;;  %1047 = vmatpush.msrb.mxu1 %v926_v46 }
  0xb6   :  { %v3206_v47 = vpop.f32.mrf.mxu0  ;;  %v3208_v48 = vpop.f32.mrf.mxu1 }
  0xb9   :  { %2722 = vmatmul.msk.f32.gmra.mxu0 %vm84_vm0, %v53_v49  ;;  %2758 = vmatmul.msk.f32.gmra.mxu1 %vm84_vm0, %v53_v49  ;;  %v925_v49 = vld [vmem:[%s5029_s3 + $0x50] sm:$0xff] }
  0xba   :  { %2931 = vmatpush.msra.mxu2 %v925_v49  ;;  %1048 = vmatpush.msrb.mxu1 %v925_v49  ;;  %v937_v49 = vld [vmem:[%s5029_s3 + $0xb0] sm:$0xff] }
  0xbe   :  { %v3215_v50 = vpop.f32.mrf.mxu0  ;;  %v3217_v51 = vpop.f32.mrf.mxu1 }
  0xc1   :  { %2723 = vmatmul.msk.f32.gmra.mxu0 %vm84_vm0, %v54_v52  ;;  %2759 = vmatmul.msk.f32.gmra.mxu1 %vm84_vm0, %v54_v52 }
  0xc6   :  { %v3224_v53 = vpop.f32.mrf.mxu0  ;;  %v3226_v54 = vpop.f32.mrf.mxu1 }
  0xc9   :  { %2724 = vmatmul.msk.f32.gmra.mxu0 %vm84_vm0, %v55_v55  ;;  %2760 = vmatmul.msk.f32.gmra.mxu1 %vm84_vm0, %v55_v55 }
  0xce   :  { %v3233_v56 = vpop.f32.mrf.mxu0  ;;  %v3235_v57 = vpop.f32.mrf.mxu1 }
  0xd1   :  { %2725 = vmatmul.msk.f32.gmra.mxu0 %vm84_vm0, %v56_v58  ;;  %2761 = vmatmul.msk.f32.gmra.mxu1 %vm84_vm0, %v56_v58  ;;  %v924_v58 = vld [vmem:[%s5029_s3 + $0x48] sm:$0xff] }
  0xd2   :  { %2932 = vmatpush.msra.mxu2 %v924_v58  ;;  %1049 = vmatpush.msrb.mxu1 %v924_v58  ;;  %v936_v58 = vld [vmem:[%s5029_s3 + $0xa8] sm:$0xff] }
  0xd6   :  { %v3242_v59 = vpop.f32.mrf.mxu0  ;;  %v3244_v60 = vpop.f32.mrf.mxu1 }
  0xd9   :  { %2726 = vmatmul.msk.f32.gmra.mxu0 %vm84_vm0, %v57_v61  ;;  %2762 = vmatmul.msk.f32.gmra.mxu1 %vm84_vm0, %v57_v61  ;;  %v923_v61 = vld [vmem:[%s5029_s3 + $0x40] sm:$0xff] }
  0xda   :  { %2933 = vmatpush.msra.mxu2 %v923_v61  ;;  %1050 = vmatpush.msrb.mxu1 %v923_v61 }
  0xde   :  { %v3251_v62 = vpop.f32.mrf.mxu0  ;;  %v3253_v63 = vpop.f32.mrf.mxu1 }
  0xdf   :  { %499 = vrot.lane.b32.xlu0 %v3251_v62, %s2978_s27 }
  0xe1   :  { %2727 = vmatmul.msk.f32.gmra.mxu0 %vm84_vm0, %v58_v0  ;;  %2763 = vmatmul.msk.f32.gmra.mxu1 %vm84_vm0, %v58_v0 }
  0xe6   :  { %v3262_v1 = vpop.f32.mrf.mxu0  ;;  %v3264_v2 = vpop.f32.mrf.mxu1 }
  0xe7   :  { %679 = vrot.lane.b32.xlu0 %v3253_v63, %s2978_s27 }
  0xe9   :  { %2728 = vmatmul.msk.f32.gmra.mxu0 %vm84_vm0, %v59_v3  ;;  %2764 = vmatmul.msk.f32.gmra.mxu1 %vm84_vm0, %v59_v3 }
  0xee   :  { %v3273_v4 = vpop.f32.mrf.mxu0  ;;  %v3275_v5 = vpop.f32.mrf.mxu1 }
  0xf1   :  { %2729 = vmatmul.msk.f32.gmra.mxu0 %vm84_vm0, %v60_v6  ;;  %2765 = vmatmul.msk.f32.gmra.mxu1 %vm84_vm0, %v60_v6 }
  0xf6   :  { %v3282_v7 = vpop.f32.mrf.mxu0  ;;  %v3284_v8 = vpop.f32.mrf.mxu1 }
  0xf7   :  { %505 = vrot.lane.b32.xlu1 %v3282_v7, %s2978_s27 }
  0xf9   :  { %2730 = vmatmul.msk.f32.gmra.mxu0 %vm84_vm0, %v61_v9  ;;  %2766 = vmatmul.msk.f32.gmra.mxu1 %vm84_vm0, %v61_v9 }
  0xfe   :  { %v3293_v10 = vpop.f32.mrf.mxu0  ;;  %v3295_v11 = vpop.f32.mrf.mxu1 }
  0xff   :  { %685 = vrot.lane.b32.xlu1 %v3284_v8, %s2978_s27  ;;  %507 = vrot.lane.b32.xlu2 %v3293_v10, %s2978_s27 }
 0x101   :  { %2731 = vmatmul.msk.f32.gmra.mxu0 %vm84_vm0, %v62_v12  ;;  %2767 = vmatmul.msk.f32.gmra.mxu1 %vm84_vm0, %v62_v12 }
 0x106   :  { %v3306_v13 = vpop.f32.mrf.mxu0  ;;  %v3308_v14 = vpop.f32.mrf.mxu1 }
 0x107   :  { %689 = vrot.lane.b32.xlu1 %v3308_v14, %s2978_s27  ;;  %687 = vrot.lane.b32.xlu2 %v3295_v11, %s2978_s27 }
 0x108   :  { %509 = vrot.lane.b32.xlu0 %v3306_v13, %s2978_s27 }
 0x109   :  { %2732 = vmatmul.msk.f32.gmra.mxu0 %vm84_vm0, %v63_v15  ;;  %2768 = vmatmul.msk.f32.gmra.mxu1 %vm84_vm0, %v63_v15  ;;  %v3443_v15 = vld [vmem:[%s5028_s2] ss:$0 sm:$0xff] }
 0x10e   :  { %v3321_v16 = vpop.f32.mrf.mxu0  ;;  %v3323_v17 = vpop.f32.mrf.mxu1 }
 0x10f   :  { %511 = vrot.lane.b32.xlu2 %v3321_v16, %s2978_s27 }
 0x110   :  { %691 = vrot.lane.b32.xlu0 %v3323_v17, %s2978_s27 }
 0x111   :  { %2733 = vmatmul.msk.f32.gmra.mxu0 %vm84_vm0, %v64_v18  ;;  %2769 = vmatmul.msk.f32.gmra.mxu1 %vm84_vm0, %v64_v18 }
 0x116   :  { %v3334_v19 = vpop.f32.mrf.mxu0  ;;  %v3336_v20 = vpop.f32.mrf.mxu1 }
 0x119   :  { %2734 = vmatmul.msk.f32.gmra.mxu0 %vm84_vm0, %v65_v21 }
 0x11e   :  { %v3343_v22 = vpop.f32.mrf.mxu0  ;;  %v3345_v23 = vpop.f32.mrf.mxu1 }
 0x121   :  { %2735 = vmatmul.msk.f32.gmra.mxu0 %vm84_vm0, %v66_v24 }
 0x126   :  { %v3352_v25 = vpop.f32.mrf.mxu0  ;;  %v3354_v26 = vpop.f32.mrf.mxu1 }
 0x127   :  { %697 = vrot.lane.b32.xlu2 %v3354_v26, %s2978_s27  ;;  %517 = vrot.lane.b32.xlu1 %v3352_v25, %s2978_s27 }
 0x129   :  { %2736 = vmatmul.msk.f32.gmra.mxu0 %vm84_vm0, %v67_v27 }
 0x12e   :  { %v3365_v28 = vpop.f32.mrf.mxu0  ;;  %v3367_v29 = vpop.f32.mrf.mxu1 }
 0x12f   :  { %699 = vrot.lane.b32.xlu1 %v3367_v29, %s2978_s27  ;;  %519 = vrot.lane.b32.xlu0 %v3365_v28, %s2978_s27 }
 0x136   :  { %v3382_v37 = vpop.f32.mrf.mxu0  ;;  %v3384_v40 = vpop.f32.mrf.mxu1 }
 0x137   :  { %659 = vrot.lane.b32.xlu1 %v3163_v33, %s2978_s27  ;;  %701 = vrot.lane.b32.xlu0 %v3384_v40, %s2978_s27 }
 0x138   :  { %521 = vrot.lane.b32.xlu2 %v3382_v37, %s2978_s27 }
 0x13e   :  { %v3401_v52 = vpop.f32.mrf.mxu0  ;;  %v3403_v55 = vpop.f32.mrf.mxu1 }
 0x13f   :  { %479 = vrot.lane.b32.xlu0 %v3161_v32, %s2978_s27  ;;  %523 = vrot.lane.b32.xlu1 %v3401_v52, %s2978_s27 }
 0x140   :  { %703 = vrot.lane.b32.xlu2 %v3403_v55, %s2978_s27 }
 0x146   :  { %v3423_v0 = vpop.f32.mrf.mxu0  ;;  %v3446_v21 = vpop.f32.mrf.mxu1 }
 0x147   :  { %663 = vrot.lane.b32.xlu0 %v3181_v39, %s2978_s27  ;;  %481 = vrot.lane.b32.xlu1 %v3170_v35, %s2978_s27  ;;  %5049 = vst [vmem:[#allocation2_spill] sm:$0xff] %v3423_v0 }
 0x148   :  { %483 = vrot.lane.b32.xlu2 %v3179_v38, %s2978_s27  ;;  %5050 = vst [vmem:[#allocation3_spill] sm:$0xff] %v3446_v21 }
 0x14e   :  { %v3431_v6 = vpop.f32.mrf.mxu0  ;;  %v3464_v31 = vpop.f32.mrf.mxu1 }
 0x14f   :  { %485 = vrot.lane.b32.xlu0 %v3188_v41, %s2978_s27  ;;  %665 = vrot.lane.b32.xlu1 %v3190_v42, %s2978_s27 }
 0x150   :  { %661 = vrot.lane.b32.xlu2 %v3172_v36, %s2978_s27 }
 0x151   :  { %v500_v3 = vpop.permute.xlu0 %499 }
 0x152   :  { %v597_v12 = vmax.f32 %v3251_v62, %v500_v3 }
 0x156   :  { %v3449_v30 = vpop.f32.mrf.mxu0  ;;  %v3480_v61 = vpop.f32.mrf.mxu1 }
 0x157   :  { %667 = vrot.lane.b32.xlu0 %v3199_v45, %s2978_s27  ;;  %489 = vrot.lane.b32.xlu1 %v3206_v47, %s2978_s27  ;;  %5053 = vst [vmem:[#allocation6_spill] sm:$0xff] %v3480_v61 }
 0x158   :  { %487 = vrot.lane.b32.xlu2 %v3197_v44, %s2978_s27 }
 0x159   :  { %v680_v9 = vpop.permute.xlu0 %679  ;;  %v508_v34 = vpop.permute.xlu2 %507 }
 0x15a   :  { %v777_v18 = vmax.f32 %v3253_v63, %v680_v9  ;;  %v938_v63 = vld [vmem:[%s5029_s3 + $0xb8] sm:$0xff] }
 0x15b   :  { %1197 = vmatpush.msrb.mxu2 %v938_v63 }
 0x15c   :  { %v813_v24 = vmax.f32 %v597_v12, %v777_v18 }
 0x15d   :  { %1198 = vmatpush.msrb.mxu2 %v937_v49 }
 0x15e   :  { %v853_v27 = vadd.f32 %v3443_v15, %v813_v24  ;;  %v3472_v43 = vpop.f32.mrf.mxu0 }
 0x15f   :  { %491 = vrot.lane.b32.xlu0 %v3215_v50, %s2978_s27  ;;  %671 = vrot.lane.b32.xlu1 %v3217_v51, %s2978_s27  ;;  %5052 = vst [vmem:[#allocation5_spill] sm:$0xff] %v3472_v43 }
 0x160   :  { %v3455_v62 = vmax.f32 %v853_v27, 0.0  ;;  %669 = vrot.lane.b32.xlu2 %v3208_v48, %s2978_s27  ;;  %1199 = vmatpush.msrb.mxu2 %v936_v58  ;;  %v935_v27 = vld [vmem:[%s5029_s3 + $0xa0] sm:$0xff]  ;;  %v601_v58 = vmax.f32 %v3293_v10, %v508_v34 }
 0x161   :  { %v688_v3 = vpop.permute.xlu2 %687 }
 0x162   :  { %5051 = vst [vmem:[#allocation4_spill] sm:$0xff] %v3455_v62  ;;  %2780 = vmatmul.msk.f32.vlgmr.msra.gmra.mxu2 %vm84_vm0, %v3455_v62  ;;  %v781_v63 = vmax.f32 %v3295_v11, %v688_v3 }
 0x163   :  { %1200 = vmatpush.msrb.mxu2 %v935_v27 }
 0x166   :  { %v3490_v24 = vpop.f32.mrf.mxu0 }
 0x167   :  { %675 = vrot.lane.b32.xlu0 %v3235_v57, %s2978_s27  ;;  %493 = vrot.lane.b32.xlu1 %v3224_v53, %s2978_s27  ;;  %5054 = vst [vmem:[#allocation7_spill] sm:$0xff] %v3490_v24 }
 0x168   :  { %495 = vrot.lane.b32.xlu2 %v3233_v56, %s2978_s27 }
 0x169   :  { %v506_v46 = vpop.permute.xlu1 %505  ;;  %v512_v27 = vpop.permute.xlu2 %511 }
 0x16a   :  { %v600_v12 = vmax.f32 %v3282_v7, %v506_v46  ;;  %v817_v7 = vmax.f32 %v601_v58, %v781_v63  ;;  %v3506_v46 = vpop.f32.mrf.mxu1 }
 0x16c   :  { %v857_v10 = vadd.f32 %v3443_v15, %v817_v7  ;;  %v603_v7 = vmax.f32 %v3321_v16, %v512_v27  ;;  %v970_v16 = vld [vmem:[%s5029_s3 + $0x1b8] sm:$0xff] }
 0x16d   :  { %1551 = vmatpush.msrb.mxu0 %v970_v16 }
 0x16f   :  { %497 = vrot.lane.b32.xlu0 %v3242_v59, %s2978_s27  ;;  %677 = vrot.lane.b32.xlu1 %v3244_v60, %s2978_s27 }
 0x170   :  { %673 = vrot.lane.b32.xlu2 %v3226_v54, %s2978_s27 }
 0x171   :  { %v686_v9 = vpop.permute.xlu1 %685 }
 0x172   :  { %v780_v18 = vmax.f32 %v3284_v8, %v686_v9  ;;  %v3528_v63 = vpop.f32.mrf.mxu1 }
 0x174   :  { %v816_v49 = vmax.f32 %v600_v12, %v780_v18  ;;  %v3513_v12 = vpop.f32.mrf.mxu0 }
 0x175   :  { %5055 = vst [vmem:[#allocation8_spill] sm:$0xff] %v3513_v12 }
 0x176   :  { %v856_v62 = vadd.f32 %v3443_v15, %v816_v49 }
 0x177   :  { %681 = vrot.lane.b32.xlu0 %v3264_v2, %s2978_s27  ;;  %503 = vrot.lane.b32.xlu1 %v3273_v4, %s2978_s27 }
 0x178   :  { %v3502_v8 = vmax.f32 %v856_v62, 0.0  ;;  %501 = vrot.lane.b32.xlu2 %v3262_v1, %s2978_s27  ;;  %v3519_v62 = vmax.f32 %v857_v10, 0.0 }
 0x179   :  { %v690_v11 = vpop.permute.xlu1 %689 }
 0x17a   :  { %v510_v3 = vpop.permute.xlu0 %509  ;;  %2781 = vmatmul.msk.f32.gmra.mxu2 %vm84_vm0, %v3502_v8  ;;  %v782_v34 = vmax.f32 %v3308_v14, %v690_v11  ;;  %v934_v14 = vld [vmem:[%s5029_s3 + $0x98] sm:$0xff]  ;;  %v3558_v27 = vpop.f32.mrf.mxu1 }
 0x17b   :  { %v602_v9 = vmax.f32 %v3306_v13, %v510_v3  ;;  %1201 = vmatpush.msrb.mxu2 %v934_v14  ;;  %5056 = vst [vmem:[#allocation9_spill] sm:$0xff] %v3558_v27 }
 0x17c   :  { %v3533_v11 = vpop.f32.mrf.mxu0 }
 0x17d   :  { %v818_v18 = vmax.f32 %v602_v9, %v782_v34  ;;  %v921_v34 = vld [vmem:[%s5029_s3 + $0x30] sm:$0xff] }
 0x17e   :  { %v933_v9 = vld [vmem:[%s5029_s3 + $0x90] sm:$0xff] }
 0x17f   :  { %513 = vrot.lane.b32.xlu0 %v3334_v19, %s2978_s27  ;;  %693 = vrot.lane.b32.xlu1 %v3336_v20, %s2978_s27  ;;  %v858_v49 = vadd.f32 %v3443_v15, %v818_v18 }
 0x180   :  { %683 = vrot.lane.b32.xlu2 %v3275_v5, %s2978_s27  ;;  %1202 = vmatpush.msrb.mxu2 %v933_v9 }
 0x181   :  { %v3539_v3 = vmax.f32 %v858_v49, 0.0  ;;  %v698_v18 = vpop.permute.xlu2 %697 }
 0x182   :  { %v692_v13 = vpop.permute.xlu0 %691  ;;  %2782 = vmatmul.msk.f32.gmra.mxu2 %vm84_vm0, %v3519_v62  ;;  %v3587_v9 = vpop.f32.mrf.mxu1 }
 0x183   :  { %v783_v58 = vmax.f32 %v3323_v17, %v692_v13  ;;  %v922_v17 = vld [vmem:[%s5029_s3 + $0x38] sm:$0xff]  ;;  %v920_v13 = vld [vmem:[%s5029_s3 + $0x28] sm:$0xff] }
 0x184   :  { %1120 = vmatpush.msrb.mxu3 %v922_v17  ;;  %v918_v17 = vld [vmem:[%s5029_s3 + $0x18] sm:$0xff] }
 0x185   :  { %v819_v10 = vmax.f32 %v603_v7, %v783_v58  ;;  %v3571_v58 = vpop.f32.mrf.mxu0  ;;  %v919_v7 = vld [vmem:[%s5029_s3 + $0x20] sm:$0xff] }
 0x186   :  { %1121 = vmatpush.msrb.mxu3 %v921_v34  ;;  %v917_v34 = vld [vmem:[%s5029_s3 + $0x10] sm:$0xff] }
 0x187   :  { %695 = vrot.lane.b32.xlu0 %v3345_v23, %s2978_s27  ;;  %525 = vrot.lane.b32.xlu1 %v3423_v0, %s2978_s27  ;;  %v859_v14 = vadd.f32 %v3443_v15, %v819_v10  ;;  %v932_v10 = vld [vmem:[%s5029_s3 + $0x88] sm:$0xff] }
 0x188   :  { %515 = vrot.lane.b32.xlu2 %v3343_v22, %s2978_s27  ;;  %1122 = vmatpush.msrb.mxu3 %v920_v13  ;;  %v915_v13 = vld [vmem:[%s5029_s3] sm:$0xff] }
 0x189   :  { %v3567_v49 = vmax.f32 %v859_v14, 0.0  ;;  %1203 = vmatpush.msrb.mxu2 %v932_v10  ;;  %v916_v14 = vld [vmem:[%s5029_s3 + $0x8] sm:$0xff] }
 0x18a   :  { %2783 = vmatmul.msk.f32.gmra.mxu2 %vm84_vm0, %v3539_v3  ;;  %1123 = vmatpush.msrb.mxu3 %v919_v7  ;;  %v931_v7 = vld [vmem:[%s5029_s3 + $0x80] sm:$0xff] }
 0x18b   :  { %1204 = vmatpush.msrb.mxu2 %v931_v7  ;;  %v3615_v7 = vpop.f32.mrf.mxu1 }
 0x18c   :  { %1124 = vmatpush.msrb.mxu3 %v918_v17  ;;  %v786_v17 = vmax.f32 %v3354_v26, %v698_v18  ;;  %5058 = vst [vmem:[#allocation11_spill] sm:$0xff] %v3615_v7 }
 0x18e   :  { %1125 = vmatpush.msrb.mxu3 %v917_v34 }
 0x18f   :  { %707 = vrot.lane.b32.xlu1 %v3464_v31, %s2978_s27  ;;  %527 = vrot.lane.b32.xlu0 %v3431_v6, %s2978_s27 }
 0x190   :  { %705 = vrot.lane.b32.xlu2 %v3446_v21, %s2978_s27  ;;  %1126 = vmatpush.msrb.mxu3 %v916_v14  ;;  %v3606_v21 = vpop.f32.mrf.mxu0 }
 0x191   :  { %5057 = vst [vmem:[#allocation10_spill] sm:$0xff] %v3606_v21 }
 0x192   :  { %v522_v16 = vpop.permute.xlu2 %521  ;;  %2784 = vmatmul.msk.f32.gmra.mxu2 %vm84_vm0, %v3567_v49  ;;  %1127 = vmatpush.msrb.mxu3 %v915_v13 }
 0x197   :  { %709 = vrot.lane.b32.xlu0 %v3480_v61, %s2978_s27  ;;  %531 = vrot.lane.b32.xlu1 %v3472_v43, %s2978_s27 }
 0x198   :  { %529 = vrot.lane.b32.xlu2 %v3449_v30, %s2978_s27 }
 0x199   :  { %v518_v10 = vpop.permute.xlu1 %517 }
 0x19a   :  { %v606_v34 = vmax.f32 %v3352_v25, %v518_v10  ;;  %v704_v43 = vpop.permute.xlu2 %703  ;;  %v946_v25 = vld [vmem:[%s5029_s3 + $0xf8] sm:$0xff] }
 0x19b   :  { %1290 = vmatpush.msra.mxu3 %v946_v25 }
 0x19c   :  { %v822_v0 = vmax.f32 %v606_v34, %v786_v17  ;;  %v3626_v34 = vpop.f32.mrf.mxu0 }
 0x19e   :  { %v862_v14 = vadd.f32 %v3443_v15, %v822_v0 }
 0x19f   :  { %713 = vrot.lane.b32.xlu1 %v3528_v63, %s2978_s27  ;;  %533 = vrot.lane.b32.xlu0 %v3490_v24, %s2978_s27 }
 0x1a0   :  { %v3613_v61 = vmax.f32 %v862_v14, 0.0  ;;  %711 = vrot.lane.b32.xlu2 %v3506_v46, %s2978_s27  ;;  %v954_v14 = vld [vmem:[%s5029_s3 + $0x138] sm:$0xff] }
 0x1a1   :  { %v700_v26 = vpop.permute.xlu1 %699  ;;  %v520_v18 = vpop.permute.xlu0 %519  ;;  %1374 = vmatpush.msra.mxu2 %v954_v14 }
 0x1a2   :  { %v787_v0 = vmax.f32 %v3367_v29, %v700_v26  ;;  %v607_v13 = vmax.f32 %v3365_v28, %v520_v18  ;;  %v484_v10 = vpop.permute.xlu2 %483  ;;  %2785 = vmatmul.msk.f32.gmra.mxu2 %vm84_vm0, %v3613_v61  ;;  %v969_v28 = vld [vmem:[%s5029_s3 + $0x1b0] sm:$0xff]  ;;  %v608_v18 = vmax.f32 %v3382_v37, %v522_v16 }
 0x1a3   :  { %1552 = vmatpush.msrb.mxu0 %v969_v28 }
 0x1a4   :  { %v823_v17 = vmax.f32 %v607_v13, %v787_v0 }
 0x1a6   :  { %v863_v24 = vadd.f32 %v3443_v15, %v823_v17  ;;  %v3647_v17 = vpop.f32.mrf.mxu1 }
 0x1a7   :  { %715 = vrot.lane.b32.xlu0 %v3558_v27, %s2978_s27  ;;  %537 = vrot.lane.b32.xlu1 %v3533_v11, %s2978_s27  ;;  %v3653_v27 = vpop.f32.mrf.mxu0 }
 0x1a8   :  { %v3639_v29 = vmax.f32 %v863_v24, 0.0  ;;  %535 = vrot.lane.b32.xlu2 %v3513_v12, %s2978_s27  ;;  %v945_v24 = vld [vmem:[%s5029_s3 + $0xf0] sm:$0xff] }
 0x1a9   :  { %v660_v25 = vpop.permute.xlu1 %659  ;;  %v702_v26 = vpop.permute.xlu0 %701  ;;  %1291 = vmatpush.msra.mxu3 %v945_v24 }
 0x1aa   :  { %v788_v0 = vmax.f32 %v3384_v40, %v702_v26  ;;  %v662_v13 = vpop.permute.xlu2 %661  ;;  %2786 = vmatmul.msk.f32.gmra.mxu2 %vm84_vm0, %v3639_v29  ;;  %v789_v26 = vmax.f32 %v3403_v55, %v704_v43 }
 0x1ac   :  { %v824_v14 = vmax.f32 %v608_v18, %v788_v0  ;;  %v767_v18 = vmax.f32 %v3163_v33, %v660_v25 }
 0x1ae   :  { %v864_v28 = vadd.f32 %v3443_v15, %v824_v14  ;;  %v3671_v12 = vpop.f32.mrf.mxu1 }
 0x1af   :  { %719 = vrot.lane.b32.xlu0 %v3615_v7, %s2978_s27  ;;  %541 = vrot.lane.b32.xlu1 %v3606_v21, %s2978_s27  ;;  %v953_v7 = vld [vmem:[%s5029_s3 + $0x130] sm:$0xff]  ;;  %v3684_v43 = vpop.f32.mrf.mxu0 }
 0x1b0   :  { %v3659_v37 = vmax.f32 %v864_v28, 0.0  ;;  %717 = vrot.lane.b32.xlu2 %v3587_v9, %s2978_s27  ;;  %1375 = vmatpush.msra.mxu2 %v953_v7  ;;  %v589_v7 = vmax.f32 %v3179_v38, %v484_v10 }
 0x1b1   :  { %v480_v40 = vpop.permute.xlu0 %479  ;;  %v524_v16 = vpop.permute.xlu1 %523 }
 0x1b2   :  { %v587_v0 = vmax.f32 %v3161_v32, %v480_v40  ;;  %v3666_v14 = vpop.permute.xlu2 %487  ;;  %v609_v24 = vmax.f32 %v3401_v52, %v524_v16  ;;  %2787 = vmatmul.msk.f32.gmra.mxu2 %vm84_vm0, %v3659_v37 }
 0x1b4   :  { %v803_v28 = vmax.f32 %v587_v0, %v767_v18  ;;  %v825_v21 = vmax.f32 %v609_v24, %v789_v26  ;;  %v3697_v0 = vpop.f32.mrf.mxu3 }
 0x1b6   :  { %v843_v33 = vadd.f32 %v3443_v15, %v803_v28  ;;  %v865_v32 = vadd.f32 %v3443_v15, %v825_v21  ;;  %v768_v21 = vmax.f32 %v3172_v36, %v662_v13 }
 0x1b7   :  { %723 = vrot.lane.b32.xlu1 %v3671_v12, %s2978_s27  ;;  %543 = vrot.lane.b32.xlu0 %v3626_v34, %s2978_s27 }
 0x1b8   :  { %v879_v52 = vmax.f32 %v843_v33, 0.0  ;;  %v3682_v55 = vmax.f32 %v865_v32, 0.0  ;;  %539 = vrot.lane.b32.xlu2 %v3571_v58, %s2978_s27 }
 0x1b9   :  { %v664_v25 = vpop.permute.xlu0 %663  ;;  %v482_v40 = vpop.permute.xlu1 %481 }
 0x1ba   :  { %v769_v16 = vmax.f32 %v3181_v39, %v664_v25  ;;  %v3691_v26 = vpop.permute.xlu2 %669  ;;  %v588_v18 = vmax.f32 %v3170_v35, %v482_v40  ;;  %2788 = vmatmul.msk.f32.gmra.mxu2 %vm84_vm0, %v3682_v55  ;;  %2789 = vmatmul.msk.f32.vlgmr.msrb.gmra.mxu3 %vm84_vm0, %v879_v52  ;;  %v944_v39 = vld [vmem:[%s5029_s3 + $0xe8] sm:$0xff]  ;;  %v3717_v40 = vpop.f32.mrf.mxu0 }
 0x1bb   :  { %1292 = vmatpush.msra.mxu3 %v944_v39 }
 0x1bc   :  { %v805_v24 = vmax.f32 %v589_v7, %v769_v16  ;;  %v804_v28 = vmax.f32 %v588_v18, %v768_v21  ;;  %v3719_v21 = vpop.f32.mrf.mxu3  ;;  %v952_v18 = vld [vmem:[%s5029_s3 + $0x128] sm:$0xff] }
 0x1bd   :  { %1376 = vmatpush.msra.mxu2 %v952_v18  ;;  %v943_v18 = vld [vmem:[%s5029_s3 + $0xe0] sm:$0xff] }
 0x1be   :  { %v845_v38 = vadd.f32 %v3443_v15, %v805_v24  ;;  %v844_v10 = vadd.f32 %v3443_v15, %v804_v28  ;;  %v967_v24 = vld [vmem:[%s5029_s3 + $0x1a0] sm:$0xff]  ;;  %1293 = vmatpush.msra.mxu3 %v943_v18 }
 0x1bf   :  { %725 = vrot.lane.b32.xlu1 %v3697_v0, %s2978_s27  ;;  %545 = vrot.lane.b32.xlu0 %v3653_v27, %s2978_s27 }
 0x1c0   :  { %v881_v35 = vmax.f32 %v845_v38, 0.0  ;;  %v880_v36 = vmax.f32 %v844_v10, 0.0  ;;  %721 = vrot.lane.b32.xlu2 %v3647_v17, %s2978_s27  ;;  %v591_v10 = vmax.f32 %v3197_v44, %v3666_v14 }
 0x1c1   :  { %v486_v13 = vpop.permute.xlu0 %485  ;;  %v666_v33 = vpop.permute.xlu1 %665 }
 0x1c2   :  { %v590_v32 = vmax.f32 %v3188_v41, %v486_v13  ;;  %v3711_v52 = vpop.permute.xlu2 %495  ;;  %v770_v7 = vmax.f32 %v3190_v42, %v666_v33  ;;  %2773 = vmatmul.msk.f32.vlgmr.msrb.gmra.mxu1 %vm84_vm0, %v880_v36  ;;  %2790 = vmatmul.msk.f32.gmra.mxu3 %vm84_vm0, %v880_v36  ;;  %v968_v41 = vld [vmem:[%s5029_s3 + $0x1a8] sm:$0xff]  ;;  %v966_v13 = vld [vmem:[%s5029_s3 + $0x198] sm:$0xff] }
 0x1c3   :  { %2805 = vmatmul.msk.f32.vlgmr.msrb.gmra.mxu2 %vm84_vm0, %v881_v35  ;;  %1553 = vmatpush.msrb.mxu0 %v968_v41  ;;  %v978_v33 = vld [vmem:[%s5029_s3 + $0x1f8] sm:$0xff] }
 0x1c4   :  { %v806_v25 = vmax.f32 %v590_v32, %v770_v7  ;;  %1635 = vmatpush.msra.mxu1 %v978_v33  ;;  %v3752_v14 = vpop.f32.mrf.mxu3  ;;  %v977_v32 = vld [vmem:[%s5029_s3 + $0x1f0] sm:$0xff]  ;;  %v974_v33 = vld [vmem:[%s5029_s3 + $0x1d8] sm:$0xff] }
 0x1c5   :  { %1554 = vmatpush.msrb.mxu0 %v967_v24 }
 0x1c6   :  { %v846_v16 = vadd.f32 %v3443_v15, %v806_v25  ;;  %1636 = vmatpush.msra.mxu1 %v977_v32  ;;  %v772_v25 = vmax.f32 %v3208_v48, %v3691_v26  ;;  %v963_v48 = vld [vmem:[%s5029_s3 + $0x180] sm:$0xff]  ;;  %v972_v32 = vld [vmem:[%s5029_s3 + $0x1c8] sm:$0xff] }
 0x1c7   :  { %727 = vrot.lane.b32.xlu0 %v3719_v21, %s2978_s27  ;;  %549 = vrot.lane.b32.xlu1 %v3717_v40, %s2978_s27 }
 0x1c8   :  { %v882_v42 = vmax.f32 %v846_v16, 0.0  ;;  %547 = vrot.lane.b32.xlu2 %v3684_v43, %s2978_s27  ;;  %1555 = vmatpush.msrb.mxu0 %v966_v13  ;;  %v976_v16 = vld [vmem:[%s5029_s3 + $0x1e8] sm:$0xff] }
 0x1c9   :  { %v668_v28 = vpop.permute.xlu0 %667  ;;  %v490_v38 = vpop.permute.xlu1 %489  ;;  %1637 = vmatpush.msra.mxu1 %v976_v16 }
 0x1ca   :  { %v771_v36 = vmax.f32 %v3199_v45, %v668_v28  ;;  %v3740_v39 = vpop.permute.xlu2 %673  ;;  %2774 = vmatmul.msk.f32.gmra.mxu1 %vm84_vm0, %v881_v35  ;;  %2791 = vmatmul.msk.f32.gmra.mxu3 %vm84_vm0, %v881_v35  ;;  %v592_v45 = vmax.f32 %v3206_v47, %v490_v38  ;;  %v965_v35 = vld [vmem:[%s5029_s3 + $0x190] sm:$0xff]  ;;  %v964_v47 = vld [vmem:[%s5029_s3 + $0x188] sm:$0xff]  ;;  %v975_v38 = vld [vmem:[%s5029_s3 + $0x1e0] sm:$0xff] }
 0x1cb   :  { %2806 = vmatmul.msk.f32.gmra.mxu2 %vm84_vm0, %v882_v42  ;;  %1556 = vmatpush.msrb.mxu0 %v965_v35  ;;  %v774_v18 = vmax.f32 %v3226_v54, %v3740_v39 }
 0x1cc   :  { %v807_v44 = vmax.f32 %v591_v10, %v771_v36  ;;  %v808_v26 = vmax.f32 %v592_v45, %v772_v25  ;;  %1638 = vmatpush.msra.mxu1 %v975_v38 }
 0x1cd   :  { %1557 = vmatpush.msrb.mxu0 %v964_v47 }
 0x1ce   :  { %v847_v7 = vadd.f32 %v3443_v15, %v807_v44  ;;  %1639 = vmatpush.msra.mxu1 %v974_v33 }
 0x1cf   :  { %1558 = vmatpush.msrb.mxu0 %v963_v48 }
 0x1d0   :  { %v883_v41 = vmax.f32 %v847_v7, 0.0  ;;  %729 = vrot.lane.b32.xlu2 %v3752_v14, %s2978_s27  ;;  %v595_v7 = vmax.f32 %v3233_v56, %v3711_v52  ;;  %v971_v56 = vld [vmem:[%s5029_s3 + $0x1c0] sm:$0xff] }
 0x1d1   :  { %v492_v24 = vpop.permute.xlu0 %491  ;;  %v672_v28 = vpop.permute.xlu1 %671 }
 0x1d2   :  { %v593_v10 = vmax.f32 %v3215_v50, %v492_v24  ;;  %v773_v36 = vmax.f32 %v3217_v51, %v672_v28  ;;  %2775 = vmatmul.msk.f32.gmra.mxu1 %vm84_vm0, %v882_v42  ;;  %2792 = vmatmul.msk.f32.gmra.mxu3 %vm84_vm0, %v882_v42  ;;  %v3784_v13 = vpop.permute.xlu2 %501  ;;  %v951_v50 = vld [vmem:[%s5029_s3 + $0x120] sm:$0xff]  ;;  %v848_v51 = vadd.f32 %v3443_v15, %v808_v26  ;;  %v973_v42 = vld [vmem:[%s5029_s3 + $0x1d0] sm:$0xff]  ;;  %v942_v28 = vld [vmem:[%s5029_s3 + $0xd8] sm:$0xff] }
 0x1d3   :  { %2807 = vmatmul.msk.f32.gmra.mxu2 %vm84_vm0, %v883_v41  ;;  %1640 = vmatpush.msra.mxu1 %v973_v42 }
 0x1d4   :  { %v809_v44 = vmax.f32 %v593_v10, %v773_v36  ;;  %1377 = vmatpush.msra.mxu2 %v951_v50  ;;  %v884_v16 = vmax.f32 %v848_v51, 0.0  ;;  %1294 = vmatpush.msra.mxu3 %v942_v28 }
 0x1d5   :  { %1641 = vmatpush.msra.mxu1 %v972_v32 }
 0x1d6   :  { %v3798_v45 = vadd.f32 %v3443_v15, %v809_v44 }
 0x1d7   :  { %1642 = vmatpush.msra.mxu1 %v971_v56 }
 0x1d8   :  { %v885_v35 = vmax.f32 %v3798_v45, 0.0 }
 0x1d9   :  { %v676_v25 = vpop.permute.xlu0 %675  ;;  %v494_v47 = vpop.permute.xlu1 %493 }
 0x1da   :  { %v775_v48 = vmax.f32 %v3235_v57, %v676_v25  ;;  %v594_v26 = vmax.f32 %v3224_v53, %v494_v47  ;;  %2776 = vmatmul.msk.f32.gmra.mxu1 %vm84_vm0, %v883_v41  ;;  %2793 = vmatmul.msk.f32.gmra.mxu3 %vm84_vm0, %v885_v35  ;;  %v684_v54 = vpop.permute.xlu2 %683 }
 0x1db   :  { %2808 = vmatmul.msk.f32.gmra.mxu2 %vm84_vm0, %v884_v16  ;;  %v779_v32 = vmax.f32 %v3275_v5, %v684_v54  ;;  %v598_v5 = vmax.f32 %v3262_v1, %v3784_v13  ;;  %v949_v54 = vld [vmem:[%s5029_s3 + $0x110] sm:$0xff] }
 0x1dc   :  { %v811_v52 = vmax.f32 %v595_v7, %v775_v48  ;;  %v810_v24 = vmax.f32 %v594_v26, %v774_v18 }
 0x1de   :  { %v851_v57 = vadd.f32 %v3443_v15, %v811_v52  ;;  %v850_v53 = vadd.f32 %v3443_v15, %v810_v24 }
 0x1e0   :  { %v3820_v39 = vmax.f32 %v851_v57, 0.0  ;;  %v3822_v41 = vmax.f32 %v850_v53, 0.0 }
 0x1e1   :  { %v498_v38 = vpop.permute.xlu0 %497  ;;  %v678_v10 = vpop.permute.xlu1 %677 }
 0x1e2   :  { %v596_v36 = vmax.f32 %v3242_v59, %v498_v38  ;;  %v776_v33 = vmax.f32 %v3244_v60, %v678_v10  ;;  %2777 = vmatmul.msk.f32.gmra.mxu1 %vm84_vm0, %v3822_v41  ;;  %2794 = vmatmul.msk.f32.gmra.mxu3 %vm84_vm0, %v3822_v41  ;;  %v516_v51 = vpop.permute.xlu2 %515  ;;  %v950_v59 = vld [vmem:[%s5029_s3 + $0x118] sm:$0xff]  ;;  %v940_v10 = vld [vmem:[%s5029_s3 + $0xc8] sm:$0xff] }
 0x1e3   :  { %2809 = vmatmul.msk.f32.gmra.mxu2 %vm84_vm0, %v3820_v39 }
 0x1e4   :  { %v812_v44 = vmax.f32 %v596_v36, %v776_v33  ;;  %1378 = vmatpush.msra.mxu2 %v950_v59  ;;  %v605_v59 = vmax.f32 %v3343_v22, %v516_v51 }
 0x1e5   :  { %v3871_v13 = vpop.f32.mrf.mxu2 }
 0x1e6   :  { %v852_v50 = vadd.f32 %v3443_v15, %v812_v44  ;;  %1379 = vmatpush.msra.mxu2 %v949_v54 }
 0x1e8   :  { %v3836_v42 = vmax.f32 %v852_v50, 0.0 }
 0x1e9   :  { %v504_v60 = vpop.permute.xlu1 %503  ;;  %v682_v7 = vpop.permute.xlu0 %681 }
 0x1ea   :  { %v599_v25 = vmax.f32 %v3273_v4, %v504_v60  ;;  %2778 = vmatmul.msk.f32.gmra.mxu1 %vm84_vm0, %v3820_v39  ;;  %2795 = vmatmul.msk.f32.gmra.mxu3 %vm84_vm0, %v3820_v39  ;;  %v778_v16 = vmax.f32 %v3264_v2, %v682_v7  ;;  %v941_v4 = vld [vmem:[%s5029_s3 + $0xd0] sm:$0xff]  ;;  %v3858_v56 = vpop.permute.xlu2 %705  ;;  %v948_v60 = vld [vmem:[%s5029_s3 + $0x108] sm:$0xff] }
 0x1eb   :  { %2810 = vmatmul.msk.f32.gmra.mxu2 %vm84_vm0, %v3836_v42  ;;  %1295 = vmatpush.msra.mxu3 %v941_v4  ;;  %v5059_v2 = vld [vmem:[#allocation4_spill] sm:$0xff] }
 0x1ec   :  { %v815_v47 = vmax.f32 %v599_v25, %v779_v32  ;;  %v814_v26 = vmax.f32 %v598_v5, %v778_v16  ;;  %1380 = vmatpush.msra.mxu2 %v948_v60  ;;  %v939_v16 = vld [vmem:[%s5029_s3 + $0xc0] sm:$0xff]  ;;  %v986_v60 = vld [vmem:[%s5029_s3 + $0x238] sm:$0xff] }
 0x1ed   :  { %1296 = vmatpush.msra.mxu3 %v940_v10 }
 0x1ee   :  { %v855_v18 = vadd.f32 %v3443_v15, %v815_v47  ;;  %v3869_v1 = vadd.f32 %v3443_v15, %v814_v26 }
 0x1ef   :  { %1297 = vmatpush.msra.mxu3 %v939_v16 }
 0x1f0   :  { %v3853_v48 = vmax.f32 %v855_v18, 0.0  ;;  %v5047_v53 = vmax.f32 %v3869_v1, 0.0 }
 0x1f1   :  { %v694_v52 = vpop.permute.xlu1 %693  ;;  %v514_v24 = vpop.permute.xlu0 %513 }
 0x1f2   :  { %2779 = vmatmul.msk.f32.gmra.mxu1 %vm84_vm0, %v3836_v42  ;;  %2796 = vmatmul.msk.f32.gmra.mxu3 %vm84_vm0, %v3836_v42  ;;  %v3879_v28 = vpop.permute.xlu2 %529  ;;  %v604_v22 = vmax.f32 %v3334_v19, %v514_v24  ;;  %v947_v24 = vld [vmem:[%s5029_s3 + $0x100] sm:$0xff] }
 0x1f3   :  { %2811 = vmatmul.msk.f32.gmra.mxu2 %vm84_vm0, %v5059_v2  ;;  %2869 = vmatmul.msk.f32.vlgmr.msrb.gmra.mxu0 %vm84_vm0, %v3853_v48 }
 0x1f4   :  { %1381 = vmatpush.msra.mxu2 %v947_v24 }
 0x1f6   :  { %1719 = vmatpush.msrb.mxu2 %v986_v60 }
 0x1f9   :  { %v3876_v57 = vpop.permute.xlu1 %525  ;;  %v696_v33 = vpop.permute.xlu0 %695 }
 0x1fa   :  { %2797 = vmatmul.msk.f32.gmra.mxu3 %vm84_vm0, %v3853_v48  ;;  %2885 = vmatmul.msk.f32.vlgmr.msra.gmra.mxu1 %vm84_vm0, %v3502_v8  ;;  %v3903_v44 = vpop.permute.xlu2 %711  ;;  %v785_v50 = vmax.f32 %v3345_v23, %v696_v33  ;;  %v784_v23 = vmax.f32 %v3336_v20, %v694_v52 }
 0x1fb   :  { %2812 = vmatmul.msk.f32.gmra.mxu2 %vm84_vm0, %v5047_v53  ;;  %2870 = vmatmul.msk.f32.gmra.mxu0 %vm84_vm0, %v3502_v8  ;;  %v5068_v53 = vld [vmem:[#allocation10_spill] sm:$0xff] }
 0x1fc   :  { %v821_v32 = vmax.f32 %v605_v59, %v785_v50  ;;  %v820_v18 = vmax.f32 %v604_v22, %v784_v23 }
 0x1fd   :  { %v3890_v38 = vpop.f32.mrf.mxu2 }
 0x1fe   :  { %v861_v51 = vadd.f32 %v3443_v15, %v821_v32  ;;  %v860_v20 = vadd.f32 %v3443_v15, %v820_v18 }
 0x200   :  { %v3930_v5 = vmax.f32 %v861_v51, 0.0  ;;  %v3949_v10 = vmax.f32 %v860_v20, 0.0  ;;  %v5061_v20 = vld [vmem:[#allocation2_spill] sm:$0xff] }
 0x201   :  { %v708_v36 = vpop.permute.xlu1 %707  ;;  %v528_v33 = vpop.permute.xlu0 %527 }
 0x202   :  { %2798 = vmatmul.msk.f32.gmra.mxu3 %vm84_vm0, %v3502_v8  ;;  %2886 = vmatmul.msk.f32.gmra.mxu1 %vm84_vm0, %v3519_v62  ;;  %v3925_v47 = vpop.permute.xlu2 %535  ;;  %v791_v22 = vmax.f32 %v3464_v31, %v708_v36  ;;  %v611_v23 = vmax.f32 %v3431_v6, %v528_v33  ;;  %v961_v31 = vld [vmem:[%s5029_s3 + $0x170] sm:$0xff]  ;;  %v612_v6 = vmax.f32 %v3449_v30, %v3879_v28  ;;  %v5060_v36 = vld [vmem:[#allocation6_spill] sm:$0xff]  ;;  %v5062_v33 = vld [vmem:[#allocation3_spill] sm:$0xff] }
 0x203   :  { %2813 = vmatmul.msk.f32.gmra.mxu2 %vm84_vm0, %v3519_v62  ;;  %2871 = vmatmul.msk.f32.gmra.mxu0 %vm84_vm0, %v3519_v62  ;;  %v985_v30 = vld [vmem:[%s5029_s3 + $0x230] sm:$0xff]  ;;  %v5063_v28 = vld [vmem:[#allocation5_spill] sm:$0xff] }
 0x204   :  { %v827_v16 = vmax.f32 %v611_v23, %v791_v22  ;;  %1720 = vmatpush.msrb.mxu2 %v985_v30 }
 0x205   :  { %v3910_v7 = vpop.f32.mrf.mxu2 }
 0x209   :  { %v3912_v25 = vpop.permute.xlu1 %531  ;;  %v710_v32 = vpop.permute.xlu0 %709 }
 0x20a   :  { %2799 = vmatmul.msk.f32.gmra.mxu3 %vm84_vm0, %v3519_v62  ;;  %2887 = vmatmul.msk.f32.gmra.mxu1 %vm84_vm0, %v3539_v3  ;;  %v718_v26 = vpop.permute.xlu2 %717  ;;  %v792_v18 = vmax.f32 %v5060_v36, %v710_v32  ;;  %v613_v32 = vmax.f32 %v5063_v28, %v3912_v25  ;;  %v5064_v25 = vld [vmem:[#allocation7_spill] sm:$0xff] }
 0x20b   :  { %2814 = vmatmul.msk.f32.gmra.mxu2 %vm84_vm0, %v3539_v3  ;;  %2872 = vmatmul.msk.f32.gmra.mxu0 %vm84_vm0, %v3539_v3  ;;  %v796_v52 = vmax.f32 %v3587_v9, %v718_v26  ;;  %v610_v26 = vmax.f32 %v5061_v20, %v3876_v57 }
 0x20d   :  { %v3938_v19 = vpop.f32.mrf.mxu2 }
 0x211   :  { %v3932_v4 = vpop.permute.xlu1 %713 }
 0x212   :  { %2800 = vmatmul.msk.f32.gmra.mxu3 %vm84_vm0, %v3539_v3  ;;  %2888 = vmatmul.msk.f32.gmra.mxu1 %vm84_vm0, %v3567_v49  ;;  %v794_v45 = vmax.f32 %v3528_v63, %v3932_v4  ;;  %v5065_v4 = vld [vmem:[#allocation11_spill] sm:$0xff] }
 0x213   :  { %2815 = vmatmul.msk.f32.gmra.mxu2 %vm84_vm0, %v3567_v49  ;;  %2873 = vmatmul.msk.f32.gmra.mxu0 %vm84_vm0, %v3930_v5 }
 0x215   :  { %v3962_v59 = vpop.f32.mrf.mxu2 }
 0x219   :  { %v538_v54 = vpop.permute.xlu1 %537 }
 0x21a   :  { %v616_v50 = vmax.f32 %v3533_v11, %v538_v54  ;;  %2801 = vmatmul.msk.f32.gmra.mxu3 %vm84_vm0, %v3930_v5  ;;  %2889 = vmatmul.msk.f32.gmra.mxu1 %vm84_vm0, %v3613_v61  ;;  %v962_v11 = vld [vmem:[%s5029_s3 + $0x178] sm:$0xff]  ;;  %v534_v54 = vpop.permute.xlu0 %533 }
 0x21b   :  { %2816 = vmatmul.msk.f32.gmra.mxu2 %vm84_vm0, %v3949_v10  ;;  %2874 = vmatmul.msk.f32.gmra.mxu0 %vm84_vm0, %v3613_v61 }
 0x21c   :  { %v3960_v9 = vmax.f32 %v616_v50, %v796_v52  ;;  %1458 = vmatpush.msrb.mxu3 %v962_v11  ;;  %v3999_v52 = vadd.f32 %v3443_v15, %v827_v16  ;;  %v790_v50 = vmax.f32 %v5062_v33, %v3858_v56  ;;  %v828_v11 = vmax.f32 %v612_v6, %v792_v18  ;;  %v540_v33 = vpop.permute.xlu2 %539 }
 0x21d   :  { %v793_v56 = vmax.f32 %v3506_v46, %v3903_v44  ;;  %v960_v46 = vld [vmem:[%s5029_s3 + $0x168] sm:$0xff]  ;;  %v617_v63 = vmax.f32 %v3571_v58, %v540_v33 }
 0x21e   :  { %1459 = vmatpush.msrb.mxu3 %v961_v31  ;;  %v826_v60 = vmax.f32 %v610_v26, %v790_v50  ;;  %v5048_v22 = vmax.f32 %v3999_v52, 0.0  ;;  %v868_v57 = vadd.f32 %v3443_v15, %v828_v11 }
 0x21f   :  { %v829_v6 = vmax.f32 %v613_v32, %v793_v56  ;;  %v984_v56 = vld [vmem:[%s5029_s3 + $0x228] sm:$0xff] }
 0x220   :  { %v866_v23 = vadd.f32 %v3443_v15, %v826_v60  ;;  %v4026_v31 = vmax.f32 %v868_v57, 0.0  ;;  %1460 = vmatpush.msrb.mxu3 %v960_v46  ;;  %v5066_v57 = vld [vmem:[#allocation8_spill] sm:$0xff]  ;;  %1721 = vmatpush.msrb.mxu2 %v984_v56 }
 0x221   :  { %v869_v44 = vadd.f32 %v3443_v15, %v829_v6  ;;  %v615_v28 = vmax.f32 %v5066_v57, %v3925_v47  ;;  %v542_v58 = vpop.permute.xlu1 %541 }
 0x222   :  { %2802 = vmatmul.msk.f32.gmra.mxu3 %vm84_vm0, %v3613_v61  ;;  %2890 = vmatmul.msk.f32.gmra.mxu1 %vm84_vm0, %v3639_v29  ;;  %v716_v36 = vpop.permute.xlu0 %715  ;;  %v4028_v18 = vmax.f32 %v866_v23, 0.0  ;;  %v5067_v23 = vld [vmem:[#allocation9_spill] sm:$0xff] }
 0x223   :  { %2817 = vmatmul.msk.f32.gmra.mxu2 %vm84_vm0, %v3639_v29  ;;  %2875 = vmatmul.msk.f32.gmra.mxu0 %vm84_vm0, %v3639_v29  ;;  %v4048_v11 = vmax.f32 %v869_v44, 0.0  ;;  %v795_v6 = vmax.f32 %v5067_v23, %v716_v36 }
 0x225   :  { %v3980_v51 = vpop.f32.mrf.mxu2 }
 0x229   :  { %v724_v57 = vpop.permute.xlu1 %723 }
 0x22a   :  { %2803 = vmatmul.msk.f32.gmra.mxu3 %vm84_vm0, %v3639_v29  ;;  %2891 = vmatmul.msk.f32.gmra.mxu1 %vm84_vm0, %v3659_v37  ;;  %v720_v30 = vpop.permute.xlu0 %719 }
 0x22b   :  { %2818 = vmatmul.msk.f32.gmra.mxu2 %vm84_vm0, %v3659_v37  ;;  %2876 = vmatmul.msk.f32.gmra.mxu0 %vm84_vm0, %v3659_v37 }
 0x22d   :  { %v4001_v24 = vpop.f32.mrf.mxu2 }
 0x232   :  { %2804 = vmatmul.msk.f32.gmra.mxu3 %vm84_vm0, %v3659_v37  ;;  %2892 = vmatmul.msk.f32.gmra.mxu1 %vm84_vm0, %v3682_v55 }
 0x233   :  { %2819 = vmatmul.msk.f32.gmra.mxu2 %vm84_vm0, %v3682_v55  ;;  %2877 = vmatmul.msk.f32.gmra.mxu0 %vm84_vm0, %v5048_v22  ;;  %v618_v22 = vmax.f32 %v5068_v53, %v542_v58  ;;  %v959_v53 = vld [vmem:[%s5029_s3 + $0x160] sm:$0xff]  ;;  %v799_v58 = vmax.f32 %v3671_v12, %v724_v57 }
 0x234   :  { %1461 = vmatpush.msrb.mxu3 %v959_v53  ;;  %v958_v53 = vld [vmem:[%s5029_s3 + $0x158] sm:$0xff] }
 0x235   :  { %v4024_v16 = vpop.f32.mrf.mxu2 }
 0x236   :  { %1462 = vmatpush.msrb.mxu3 %v958_v53 }
 0x23a   :  { %2821 = vmatmul.msk.f32.vlgmr.msra.gmra.mxu3 %vm84_vm0, %v885_v35  ;;  %2893 = vmatmul.msk.f32.gmra.mxu1 %vm84_vm0, %v4026_v31  ;;  %v614_v35 = vmax.f32 %v5064_v25, %v534_v54  ;;  %v797_v54 = vmax.f32 %v5065_v4, %v720_v30  ;;  %v831_v30 = vmax.f32 %v615_v28, %v795_v6  ;;  %v722_v4 = vpop.permute.xlu2 %721 }
 0x23b   :  { %2820 = vmatmul.msk.f32.gmra.mxu2 %vm84_vm0, %v4028_v18  ;;  %2878 = vmatmul.msk.f32.gmra.mxu0 %vm84_vm0, %v4026_v31  ;;  %v798_v47 = vmax.f32 %v3647_v17, %v722_v4  ;;  %v726_v4 = vpop.permute.xlu1 %725 }
 0x23c   :  { %v830_v60 = vmax.f32 %v614_v35, %v794_v45  ;;  %v871_v17 = vadd.f32 %v3443_v15, %v831_v30 }
 0x23d   :  { %v4046_v20 = vpop.f32.mrf.mxu2  ;;  %v1129_v26 = vpop.f32.mrf.mxu3 }
 0x23e   :  { %v870_v32 = vadd.f32 %v3443_v15, %v830_v60  ;;  %v4088_v23 = vmax.f32 %v871_v17, 0.0  ;;  %v800_v17 = vmax.f32 %v3697_v0, %v726_v4 }
 0x23f   :  { %v1052_v50 = vpop.f32.mrf.mxu1 }
 0x240   :  { %v1130_v46 = vadd.f32 %v1129_v26, %v1052_v50  ;;  %v4069_v33 = vmax.f32 %v870_v32, 0.0  ;;  %v544_v26 = vpop.permute.xlu0 %543 }
 0x242   :  { %2822 = vmatmul.msk.f32.gmra.mxu3 %vm84_vm0, %v3822_v41  ;;  %2894 = vmatmul.msk.f32.gmra.mxu1 %vm84_vm0, %v4048_v11  ;;  %v548_v0 = vpop.permute.xlu2 %547 }
 0x243   :  { %2837 = vmatmul.msk.f32.vlgmr.msra.gmra.mxu2 %vm84_vm0, %v3822_v41  ;;  %2879 = vmatmul.msk.f32.gmra.mxu0 %vm84_vm0, %v4048_v11  ;;  %v833_v41 = vmax.f32 %v617_v63, %v797_v54  ;;  %v834_v63 = vmax.f32 %v618_v22, %v798_v47  ;;  %v983_v22 = vld [vmem:[%s5029_s3 + $0x220] sm:$0xff] }
 0x244   :  { %1722 = vmatpush.msrb.mxu2 %v983_v22  ;;  %v4108_v47 = vld [vmem:[%s5028_s2] ss:$0 sm:$0xff] }
 0x245   :  { %v1132_v44 = vpop.f32.mrf.mxu3  ;;  %v873_v36 = vadd.f32 %v3443_v15, %v833_v41  ;;  %v874_v6 = vadd.f32 %v3443_v15, %v834_v63 }
 0x246   :  { %v1206_v45 = vpop.f32.mrf.mxu2 }
 0x247   :  { %v4067_v25 = vadd.f32 %v1206_v45, %v1130_v46  ;;  %v1055_v35 = vpop.f32.mrf.mxu1  ;;  %v909_v56 = vmax.f32 %v873_v36, 0.0  ;;  %v619_v46 = vmax.f32 %v3626_v34, %v544_v26 }
 0x248   :  { %v1133_v50 = vadd.f32 %v1132_v44, %v1055_v35  ;;  %v910_v44 = vmax.f32 %v874_v6, 0.0  ;;  %v546_v41 = vpop.permute.xlu0 %545  ;;  %v621_v6 = vmax.f32 %v3684_v43, %v548_v0  ;;  %v957_v43 = vld [vmem:[%s5029_s3 + $0x150] sm:$0xff] }
 0x249   :  { %v835_v34 = vmax.f32 %v619_v46, %v799_v58  ;;  %v620_v26 = vmax.f32 %v3653_v27, %v546_v41  ;;  %v982_v27 = vld [vmem:[%s5029_s3 + $0x218] sm:$0xff]  ;;  %1463 = vmatpush.msrb.mxu3 %v957_v43 }
 0x24a   :  { %2823 = vmatmul.msk.f32.gmra.mxu3 %vm84_vm0, %v3820_v39  ;;  %2895 = vmatmul.msk.f32.gmra.mxu1 %vm84_vm0, %v4069_v33 }
 0x24b   :  { %2838 = vmatmul.msk.f32.gmra.mxu2 %vm84_vm0, %v3820_v39  ;;  %2880 = vmatmul.msk.f32.gmra.mxu0 %vm84_vm0, %v4069_v33  ;;  %v875_v36 = vadd.f32 %v4108_v47, %v835_v34  ;;  %v836_v57 = vmax.f32 %v620_v26, %v800_v17  ;;  %v981_v26 = vld [vmem:[%s5029_s3 + $0x210] sm:$0xff] }
 0x24c   :  { %1723 = vmatpush.msrb.mxu2 %v982_v27 }
 0x24d   :  { %v1135_v60 = vpop.f32.mrf.mxu3  ;;  %v4122_v63 = vmax.f32 %v875_v36, 0.0  ;;  %v876_v58 = vadd.f32 %v4108_v47, %v836_v57  ;;  %v956_v57 = vld [vmem:[%s5029_s3 + $0x148] sm:$0xff] }
 0x24e   :  { %v1209_v54 = vpop.f32.mrf.mxu2  ;;  %1724 = vmatpush.msrb.mxu2 %v981_v26  ;;  %1464 = vmatpush.msrb.mxu3 %v956_v57 }
 0x24f   :  { %v4086_v28 = vadd.f32 %v1209_v54, %v1133_v50  ;;  %v1058_v32 = vpop.f32.mrf.mxu1 }
 0x250   :  { %v1136_v15 = vadd.f32 %v1135_v60, %v1058_v32  ;;  %v728_v32 = vpop.permute.xlu0 %727 }
 0x251   :  { %v801_v46 = vmax.f32 %v3719_v21, %v728_v32 }
 0x252   :  { %2824 = vmatmul.msk.f32.gmra.mxu3 %vm84_vm0, %v3836_v42  ;;  %2896 = vmatmul.msk.f32.gmra.mxu1 %vm84_vm0, %v4088_v23 }
 0x253   :  { %2839 = vmatmul.msk.f32.gmra.mxu2 %vm84_vm0, %v3836_v42  ;;  %2881 = vmatmul.msk.f32.gmra.mxu0 %vm84_vm0, %v909_v56  ;;  %v837_v34 = vmax.f32 %v621_v6, %v801_v46 }
 0x255   :  { %v1138_v12 = vpop.f32.mrf.mxu3  ;;  %v4156_v21 = vadd.f32 %v4108_v47, %v837_v34 }
 0x256   :  { %v1212_v45 = vpop.f32.mrf.mxu2 }
 0x257   :  { %v4103_v35 = vadd.f32 %v1212_v45, %v1136_v15  ;;  %v1061_v30 = vpop.f32.mrf.mxu1  ;;  %v913_v53 = vmax.f32 %v4156_v21, 0.0 }
 0x258   :  { %v1139_v50 = vadd.f32 %v1138_v12, %v1061_v30 }
 0x25a   :  { %2825 = vmatmul.msk.f32.gmra.mxu3 %vm84_vm0, %v3853_v48  ;;  %2897 = vmatmul.msk.f32.gmra.mxu1 %vm84_vm0, %v910_v44 }
 0x25b   :  { %2840 = vmatmul.msk.f32.gmra.mxu2 %vm84_vm0, %v5059_v2  ;;  %2882 = vmatmul.msk.f32.gmra.mxu0 %vm84_vm0, %v910_v44 }
 0x25d   :  { %v1141_v60 = vpop.f32.mrf.mxu3 }
 0x25e   :  { %v1215_v48 = vpop.f32.mrf.mxu2 }
 0x25f   :  { %v4124_v54 = vadd.f32 %v1215_v48, %v1139_v50  ;;  %v1064_v56 = vpop.f32.mrf.mxu1 }
 0x260   :  { %v1142_v22 = vadd.f32 %v1141_v60, %v1064_v56 }
 0x262   :  { %2826 = vmatmul.msk.f32.gmra.mxu3 %vm84_vm0, %v3502_v8  ;;  %2898 = vmatmul.msk.f32.gmra.mxu1 %vm84_vm0, %v4122_v63 }
 0x263   :  { %2841 = vmatmul.msk.f32.gmra.mxu2 %vm84_vm0, %v3502_v8  ;;  %2883 = vmatmul.msk.f32.gmra.mxu0 %vm84_vm0, %v4122_v63  ;;  %v4142_v8 = vmax.f32 %v876_v58, 0.0 }
 0x265   :  { %v1144_v15 = vpop.f32.mrf.mxu3 }
 0x266   :  { %v1218_v12 = vpop.f32.mrf.mxu2 }
 0x267   :  { %v4140_v44 = vadd.f32 %v1218_v12, %v1142_v22  ;;  %v1067_v45 = vpop.f32.mrf.mxu1 }
 0x268   :  { %v1145_v41 = vadd.f32 %v1144_v15, %v1067_v45  ;;  %v979_v45 = vld [vmem:[%s5029_s3 + $0x200] sm:$0xff] }
 0x26a   :  { %2827 = vmatmul.msk.f32.gmra.mxu3 %vm84_vm0, %v3519_v62  ;;  %2899 = vmatmul.msk.f32.gmra.mxu1 %vm84_vm0, %v4142_v8 }
 0x26b   :  { %2842 = vmatmul.msk.f32.gmra.mxu2 %vm84_vm0, %v3519_v62  ;;  %2884 = vmatmul.msk.f32.gmra.mxu0 %vm84_vm0, %v4142_v8 }
 0x26d   :  { %v1147_v30 = vpop.f32.mrf.mxu3 }
 0x26e   :  { %v1221_v4 = vpop.f32.mrf.mxu2 }
 0x26f   :  { %v4158_v36 = vadd.f32 %v1221_v4, %v1145_v41  ;;  %v1070_v17 = vpop.f32.mrf.mxu1  ;;  %v5069_v4 = vmax.f32 %v3999_v52, 0.0 }
 0x270   :  { %v1148_v50 = vadd.f32 %v1147_v30, %v1070_v17 }
 0x272   :  { %2828 = vmatmul.msk.f32.gmra.mxu3 %vm84_vm0, %v3539_v3  ;;  %2900 = vmatmul.msk.f32.gmra.mxu1 %vm84_vm0, %v913_v53 }
 0x273   :  { %2843 = vmatmul.msk.f32.gmra.mxu2 %vm84_vm0, %v3539_v3 }
 0x275   :  { %v1150_v60 = vpop.f32.mrf.mxu3 }
 0x276   :  { %v1224_v48 = vpop.f32.mrf.mxu2  ;;  %v1151_v32 = vadd.f32 %v1150_v60, %v3871_v13 }
 0x277   :  { %v4171_v56 = vadd.f32 %v1224_v48, %v1148_v50 }
 0x27a   :  { %2829 = vmatmul.msk.f32.gmra.mxu3 %vm84_vm0, %v3930_v5  ;;  %v980_v5 = vld [vmem:[%s5029_s3 + $0x208] sm:$0xff] }
 0x27b   :  { %2844 = vmatmul.msk.f32.gmra.mxu2 %vm84_vm0, %v3567_v49 }
 0x27c   :  { %1725 = vmatpush.msrb.mxu2 %v980_v5 }
 0x27d   :  { %v1153_v0 = vpop.f32.mrf.mxu3 }
 0x27e   :  { %v1227_v27 = vpop.f32.mrf.mxu2  ;;  %v1154_v58 = vadd.f32 %v1153_v0, %v3890_v38  ;;  %1726 = vmatpush.msrb.mxu2 %v979_v45 }
 0x27f   :  { %v4181_v6 = vadd.f32 %v1227_v27, %v1151_v32 }
 0x282   :  { %2830 = vmatmul.msk.f32.gmra.mxu3 %vm84_vm0, %v3613_v61 }
 0x283   :  { %2845 = vmatmul.msk.f32.gmra.mxu2 %vm84_vm0, %v3613_v61  ;;  %v955_v61 = vld [vmem:[%s5029_s3 + $0x140] sm:$0xff]  ;;  %s2979_s3 = smov 96  }
 0x284   :  { %1465 = vmatpush.msrb.mxu3 %v955_v61 }
 0x285   :  { %v1156_v46 = vpop.f32.mrf.mxu3 }
 0x286   :  { %v1230_v22 = vpop.f32.mrf.mxu2  ;;  %v1157_v15 = vadd.f32 %v1156_v46, %v3910_v7 }
 0x287   :  { %v4191_v13 = vadd.f32 %v1230_v22, %v1154_v58 }
 0x28a   :  { %2831 = vmatmul.msk.f32.gmra.mxu3 %vm84_vm0, %v3639_v29 }
 0x28b   :  { %2846 = vmatmul.msk.f32.gmra.mxu2 %vm84_vm0, %v3639_v29 }
 0x28d   :  { %v1159_v12 = vpop.f32.mrf.mxu3 }
 0x28e   :  { %v1233_v34 = vpop.f32.mrf.mxu2  ;;  %v1160_v43 = vadd.f32 %v1159_v12, %v3938_v19 }
 0x28f   :  { %v4201_v38 = vadd.f32 %v1233_v34, %v1157_v15 }
 0x292   :  { %2832 = vmatmul.msk.f32.gmra.mxu3 %vm84_vm0, %v3659_v37 }
 0x293   :  { %2847 = vmatmul.msk.f32.gmra.mxu2 %vm84_vm0, %v3659_v37 }
 0x295   :  { %v1162_v41 = vpop.f32.mrf.mxu3 }
 0x296   :  { %v1236_v30 = vpop.f32.mrf.mxu2  ;;  %v1163_v17 = vadd.f32 %v1162_v41, %v3962_v59 }
 0x297   :  { %v4211_v7 = vadd.f32 %v1236_v30, %v1160_v43  ;;  %v5070_v43 = vmax.f32 %v3869_v1, 0.0 }
 0x29a   :  { %2833 = vmatmul.msk.f32.gmra.mxu3 %vm84_vm0, %v5069_v4 }
 0x29b   :  { %2848 = vmatmul.msk.f32.gmra.mxu2 %vm84_vm0, %v3682_v55 }
 0x29d   :  { %v1165_v26 = vpop.f32.mrf.mxu3 }
 0x29e   :  { %v1239_v50 = vpop.f32.mrf.mxu2  ;;  %v1166_v19 = vadd.f32 %v1165_v26, %v3980_v51 }
 0x29f   :  { %v4219_v60 = vadd.f32 %v1239_v50, %v1163_v17 }
 0x2a2   :  { %2834 = vmatmul.msk.f32.gmra.mxu3 %vm84_vm0, %v4026_v31 }
 0x2a3   :  { %2849 = vmatmul.msk.f32.gmra.mxu2 %vm84_vm0, %v4026_v31 }
 0x2a5   :  { %v1168_v52 = vpop.f32.mrf.mxu3 }
 0x2a6   :  { %v1242_v48 = vpop.f32.mrf.mxu2  ;;  %v1169_v59 = vadd.f32 %v1168_v52, %v4001_v24 }
 0x2a7   :  { %v4226_v57 = vadd.f32 %v1242_v48, %v1166_v19 }
 0x2aa   :  { %2835 = vmatmul.msk.f32.gmra.mxu3 %vm84_vm0, %v4048_v11 }
 0x2ab   :  { %2850 = vmatmul.msk.f32.gmra.mxu2 %vm84_vm0, %v4048_v11 }
 0x2ad   :  { %v1171_v32 = vpop.f32.mrf.mxu3 }
 0x2ae   :  { %v1245_v0 = vpop.f32.mrf.mxu2  ;;  %v1172_v51 = vadd.f32 %v1171_v32, %v4024_v16 }
 0x2af   :  { %v4233_v27 = vadd.f32 %v1245_v0, %v1169_v59 }
 0x2b2   :  { %2836 = vmatmul.msk.f32.gmra.mxu3 %vm84_vm0, %v4069_v33 }
 0x2b3   :  { %2851 = vmatmul.msk.f32.gmra.mxu2 %vm84_vm0, %v4069_v33 }
 0x2b5   :  { %v1174_v31 = vpop.f32.mrf.mxu3 }
 0x2b6   :  { %v1248_v5 = vpop.f32.mrf.mxu2  ;;  %v1175_v24 = vadd.f32 %v1174_v31, %v4046_v20 }
 0x2b7   :  { %v4240_v58 = vadd.f32 %v1248_v5, %v1172_v51 }
 0x2ba   :  { %2853 = vmatmul.msk.f32.vlgmr.msrb.gmra.mxu3 %vm84_vm0, %v3820_v39 }
 0x2bb   :  { %2852 = vmatmul.msk.f32.gmra.mxu2 %vm84_vm0, %v4088_v23 }
 0x2bd   :  { %v1299_v46 = vpop.f32.mrf.mxu3 }
 0x2be   :  { %v1251_v22 = vpop.f32.mrf.mxu2  ;;  %v1347_v61 = vadd.f32 %v1299_v46, %v4067_v25 }
 0x2bf   :  { %v4248_v15 = vadd.f32 %v1251_v22, %v1175_v24 }
 0x2c2   :  { %2854 = vmatmul.msk.f32.gmra.mxu3 %vm84_vm0, %v3836_v42 }
 0x2c3   :  { %2901 = vmatmul.msk.f32.vlgmr.msrb.gmra.mxu2 %vm84_vm0, %v3519_v62 }
 0x2c5   :  { %v1302_v16 = vpop.f32.mrf.mxu3 }
 0x2c6   :  { %v1348_v39 = vadd.f32 %v1302_v16, %v4086_v28  ;;  %v1383_v12 = vpop.f32.mrf.mxu2 }
 0x2c7   :  { %v4255_v34 = vadd.f32 %v1383_v12, %v1347_v61 }
 0x2ca   :  { %2855 = vmatmul.msk.f32.gmra.mxu3 %vm84_vm0, %v5059_v2 }
 0x2cb   :  { %2902 = vmatmul.msk.f32.gmra.mxu2 %vm84_vm0, %v3539_v3 }
 0x2cd   :  { %v1305_v20 = vpop.f32.mrf.mxu3 }
 0x2ce   :  { %v1349_v25 = vadd.f32 %v1305_v20, %v4103_v35  ;;  %v1386_v45 = vpop.f32.mrf.mxu2  ;;  %v1560_v20 = vpop.f32.mrf.mxu0 }
 0x2cf   :  { %v4262_v42 = vadd.f32 %v1386_v45, %v1348_v39 }
 0x2d2   :  { %2856 = vmatmul.msk.f32.gmra.mxu3 %vm84_vm0, %v5070_v43  ;;  %v550_v43 = vpop.permute.xlu1 %549 }
 0x2d3   :  { %2903 = vmatmul.msk.f32.gmra.mxu2 %vm84_vm0, %v3567_v49 }
 0x2d5   :  { %v1308_v28 = vpop.f32.mrf.mxu3 }
 0x2d6   :  { %v1350_v41 = vadd.f32 %v1308_v28, %v4124_v54  ;;  %v1389_v2 = vpop.f32.mrf.mxu2  ;;  %v1563_v28 = vpop.f32.mrf.mxu0 }
 0x2d7   :  { %v4270_v30 = vadd.f32 %v1389_v2, %v1349_v25 }
 0x2da   :  { %2857 = vmatmul.msk.f32.gmra.mxu3 %vm84_vm0, %v3519_v62 }
 0x2db   :  { %2904 = vmatmul.msk.f32.gmra.mxu2 %vm84_vm0, %v3949_v10 }
 0x2dd   :  { %v1311_v35 = vpop.f32.mrf.mxu3 }
 0x2de   :  { %v1351_v1 = vadd.f32 %v1311_v35, %v4140_v44  ;;  %v1392_v4 = vpop.f32.mrf.mxu2 }
 0x2df   :  { %v4277_v17 = vadd.f32 %v1392_v4, %v1350_v41 }
 0x2e2   :  { %2858 = vmatmul.msk.f32.gmra.mxu3 %vm84_vm0, %v3539_v3 }
 0x2e3   :  { %2905 = vmatmul.msk.f32.gmra.mxu2 %vm84_vm0, %v3639_v29 }
 0x2e5   :  { %v1314_v54 = vpop.f32.mrf.mxu3 }
 0x2e6   :  { %v1352_v26 = vadd.f32 %v1314_v54, %v4158_v36  ;;  %v1395_v50 = vpop.f32.mrf.mxu2 }
 0x2e7   :  { %v4284_v62 = vadd.f32 %v1395_v50, %v1351_v1 }
 0x2ea   :  { %2859 = vmatmul.msk.f32.gmra.mxu3 %vm84_vm0, %v3567_v49 }
 0x2eb   :  { %2906 = vmatmul.msk.f32.gmra.mxu2 %vm84_vm0, %v3659_v37 }
 0x2ed   :  { %v1317_v44 = vpop.f32.mrf.mxu3 }
 0x2ee   :  { %v1353_v19 = vadd.f32 %v1317_v44, %v4171_v56  ;;  %v1398_v52 = vpop.f32.mrf.mxu2 }
 0x2ef   :  { %v4291_v3 = vadd.f32 %v1398_v52, %v1352_v26 }
 0x2f2   :  { %2860 = vmatmul.msk.f32.gmra.mxu3 %vm84_vm0, %v3949_v10 }
 0x2f3   :  { %2907 = vmatmul.msk.f32.gmra.mxu2 %vm84_vm0, %v3682_v55 }
 0x2f5   :  { %v1320_v36 = vpop.f32.mrf.mxu3 }
 0x2f6   :  { %v1354_v48 = vadd.f32 %v1320_v36, %v4181_v6  ;;  %v1401_v59 = vpop.f32.mrf.mxu2 }
 0x2f7   :  { %v4298_v49 = vadd.f32 %v1401_v59, %v1353_v19 }
 0x2fa   :  { %2861 = vmatmul.msk.f32.gmra.mxu3 %vm84_vm0, %v3639_v29 }
 0x2fb   :  { %2908 = vmatmul.msk.f32.gmra.mxu2 %vm84_vm0, %v4028_v18 }
 0x2fd   :  { %v1323_v56 = vpop.f32.mrf.mxu3 }
 0x2fe   :  { %v1404_v32 = vpop.f32.mrf.mxu2  ;;  %v1355_v10 = vadd.f32 %v1323_v56, %v4191_v13 }
 0x2ff   :  { %v4304_v0 = vadd.f32 %v1404_v32, %v1354_v48 }
 0x302   :  { %2862 = vmatmul.msk.f32.gmra.mxu3 %vm84_vm0, %v3659_v37 }
 0x303   :  { %2909 = vmatmul.msk.f32.gmra.mxu2 %vm84_vm0, %v4048_v11 }
 0x305   :  { %v1326_v6 = vpop.f32.mrf.mxu3 }
 0x306   :  { %v1407_v51 = vpop.f32.mrf.mxu2  ;;  %v1356_v29 = vadd.f32 %v1326_v6, %v4201_v38 }
 0x307   :  { %v4311_v31 = vadd.f32 %v1407_v51, %v1355_v10 }
 0x30a   :  { %2863 = vmatmul.msk.f32.gmra.mxu3 %vm84_vm0, %v3682_v55  ;;  %v872_v55 = vadd.f32 %v4108_v47, %v3960_v9 }
 0x30b   :  { %2910 = vmatmul.msk.f32.gmra.mxu2 %vm84_vm0, %v4069_v33 }
 0x30c   :  { %v908_v16 = vmax.f32 %v872_v55, 0.0 }
 0x30d   :  { %v1329_v5 = vpop.f32.mrf.mxu3 }
 0x30e   :  { %v1357_v37 = vadd.f32 %v1329_v5, %v4211_v7  ;;  %v1410_v24 = vpop.f32.mrf.mxu2 }
 0x30f   :  { %v4319_v46 = vadd.f32 %v1410_v24, %v1356_v29 }
 0x312   :  { %2864 = vmatmul.msk.f32.gmra.mxu3 %vm84_vm0, %v4028_v18 }
 0x313   :  { %2911 = vmatmul.msk.f32.gmra.mxu2 %vm84_vm0, %v4088_v23 }
 0x315   :  { %v1332_v13 = vpop.f32.mrf.mxu3 }
 0x316   :  { %v1358_v22 = vadd.f32 %v1332_v13, %v4219_v60  ;;  %v1413_v61 = vpop.f32.mrf.mxu2  ;;  %v1644_v60 = vpop.f32.mrf.mxu1 }
 0x317   :  { %v4328_v38 = vadd.f32 %v1413_v61, %v1357_v37 }
 0x31a   :  { %2865 = vmatmul.msk.f32.gmra.mxu3 %vm84_vm0, %v4048_v11 }
 0x31b   :  { %2912 = vmatmul.msk.f32.gmra.mxu2 %vm84_vm0, %v908_v16 }
 0x31d   :  { %v1335_v7 = vpop.f32.mrf.mxu3 }
 0x31e   :  { %v1359_v18 = vadd.f32 %v1335_v7, %v4226_v57  ;;  %v1416_v39 = vpop.f32.mrf.mxu2  ;;  %v730_v57 = vpop.permute.xlu2 %729 }
 0x31f   :  { %v4334_v12 = vadd.f32 %v1416_v39, %v1358_v22  ;;  %v1647_v1 = vpop.f32.mrf.mxu1 }
 0x322   :  { %2866 = vmatmul.msk.f32.gmra.mxu3 %vm84_vm0, %v4069_v33  ;;  %v622_v33 = vmax.f32 %v3717_v40, %v550_v43  ;;  %v1566_v40 = vpop.f32.mrf.mxu0 }
 0x323   :  { %2913 = vmatmul.msk.f32.gmra.mxu2 %vm84_vm0, %v4122_v63 }
 0x325   :  { %v1338_v9 = vpop.f32.mrf.mxu3 }
 0x326   :  { %v1360_v25 = vadd.f32 %v1338_v9, %v4233_v27  ;;  %v1419_v11 = vpop.f32.mrf.mxu2  ;;  %v802_v27 = vmax.f32 %v3752_v14, %v730_v57 }
 0x327   :  { %v4341_v45 = vadd.f32 %v1419_v11, %v1359_v18  ;;  %v1650_v50 = vpop.f32.mrf.mxu1 }
 0x328   :  { %v838_v4 = vmax.f32 %v622_v33, %v802_v27 }
 0x32a   :  { %2867 = vmatmul.msk.f32.gmra.mxu3 %vm84_vm0, %v4088_v23  ;;  %v878_v23 = vadd.f32 %v4108_v47, %v838_v4 }
 0x32b   :  { %2914 = vmatmul.msk.f32.gmra.mxu2 %vm84_vm0, %v4142_v8 }
 0x32c   :  { %v914_v14 = vmax.f32 %v878_v23, 0.0 }
 0x32d   :  { %v1341_v41 = vpop.f32.mrf.mxu3 }
 0x32e   :  { %v1361_v63 = vadd.f32 %v1341_v41, %v4240_v58  ;;  %v1422_v2 = vpop.f32.mrf.mxu2 }
 0x32f   :  { %v4350_v35 = vadd.f32 %v1422_v2, %v1360_v25  ;;  %v1653_v47 = vpop.f32.mrf.mxu1 }
 0x332   :  { %2868 = vmatmul.msk.f32.gmra.mxu3 %vm84_vm0, %v908_v16 }
 0x333   :  { %2915 = vmatmul.msk.f32.gmra.mxu2 %vm84_vm0, %v913_v53  ;;  %v1569_v53 = vpop.f32.mrf.mxu0 }
 0x335   :  { %v1344_v8 = vpop.f32.mrf.mxu3 }
 0x336   :  { %v1362_v54 = vadd.f32 %v1344_v8, %v4248_v15  ;;  %v1425_v58 = vpop.f32.mrf.mxu2 }
 0x337   :  { %v4358_v26 = vadd.f32 %v1425_v58, %v1361_v63  ;;  %v1656_v29 = vpop.f32.mrf.mxu1 }
 0x33b   :  { %2916 = vmatmul.msk.f32.gmra.mxu2 %vm84_vm0, %v914_v14  ;;  %v1572_v6 = vpop.f32.mrf.mxu0 }
 0x33d   :  { %v1467_v44 = vpop.f32.mrf.mxu3 }
 0x33e   :  { %v1428_v19 = vpop.f32.mrf.mxu2  ;;  %v1515_v52 = vadd.f32 %v1467_v44, %v4255_v34 }
 0x33f   :  { %v4362_v21 = vadd.f32 %v1428_v19, %v1362_v54  ;;  %v1659_v18 = vpop.f32.mrf.mxu1 }
 0x340   :  { %v1608_v36 = vadd.f32 %v1560_v20, %v1515_v52 }
 0x342   :  { %v1692_v59 = vadd.f32 %v1644_v60, %v1608_v36 }
 0x345   :  { %v1470_v48 = vpop.f32.mrf.mxu3 }
 0x346   :  { %v1516_v15 = vadd.f32 %v1470_v48, %v4262_v42  ;;  %v1728_v56 = vpop.f32.mrf.mxu2  ;;  %v1575_v42 = vpop.f32.mrf.mxu0 }
 0x347   :  { %v4365_v32 = vadd.f32 %v1728_v56, %v1692_v59 }
 0x348   :  { %v1609_v10 = vadd.f32 %v1563_v28, %v1516_v15 }
 0x349   :  { %1808 = vrot.lane.b32.xlu2 %v4365_v32, %s2979_s3 }
 0x34a   :  { %v1693_v34 = vadd.f32 %v1647_v1, %v1609_v10 }
 0x34d   :  { %v1473_v51 = vpop.f32.mrf.mxu3 }
 0x34e   :  { %v1517_v5 = vadd.f32 %v1473_v51, %v4270_v30  ;;  %v1731_v37 = vpop.f32.mrf.mxu2  ;;  %v1578_v9 = vpop.f32.mrf.mxu0 }
 0x34f   :  { %v4370_v24 = vadd.f32 %v1731_v37, %v1693_v34 }
 0x350   :  { %v1610_v55 = vadd.f32 %v1566_v40, %v1517_v5 }
 0x351   :  { %1810 = vrot.lane.b32.xlu0 %v4370_v24, %s2979_s3 }
 0x352   :  { %v1694_v22 = vadd.f32 %v1650_v50, %v1610_v55 }
 0x355   :  { %v1476_v13 = vpop.f32.mrf.mxu3 }
 0x356   :  { %v1518_v61 = vadd.f32 %v1476_v13, %v4277_v17  ;;  %v1734_v16 = vpop.f32.mrf.mxu2  ;;  %v1662_v17 = vpop.f32.mrf.mxu1 }
 0x357   :  { %v4375_v7 = vadd.f32 %v1734_v16, %v1694_v22  ;;  %v1581_v2 = vpop.f32.mrf.mxu0 }
 0x358   :  { %v1611_v39 = vadd.f32 %v1569_v53, %v1518_v61 }
 0x359   :  { %1812 = vrot.lane.b32.xlu0 %v4375_v7, %s2979_s3 }
 0x35a   :  { %v1695_v20 = vadd.f32 %v1653_v47, %v1611_v39 }
 0x35d   :  { %v1479_v30 = vpop.f32.mrf.mxu3 }
 0x35e   :  { %v1519_v60 = vadd.f32 %v1479_v30, %v4284_v62  ;;  %v1737_v25 = vpop.f32.mrf.mxu2  ;;  %v1665_v62 = vpop.f32.mrf.mxu1 }
 0x35f   :  { %v4380_v11 = vadd.f32 %v1737_v25, %v1695_v20 }
 0x360   :  { %v1612_v43 = vadd.f32 %v1572_v6, %v1519_v60 }
 0x361   :  { %1814 = vrot.lane.b32.xlu0 %v4380_v11, %s2979_s3 }
 0x362   :  { %v1696_v28 = vadd.f32 %v1656_v29, %v1612_v43 }
 0x365   :  { %v1482_v57 = vpop.f32.mrf.mxu3 }
 0x366   :  { %v1520_v33 = vadd.f32 %v1482_v57, %v4291_v3  ;;  %v1740_v41 = vpop.f32.mrf.mxu2  ;;  %v1584_v3 = vpop.f32.mrf.mxu0 }
 0x367   :  { %v4385_v63 = vadd.f32 %v1740_v41, %v1696_v28  ;;  %v1668_v50 = vpop.f32.mrf.mxu1 }
 0x368   :  { %v1613_v27 = vadd.f32 %v1575_v42, %v1520_v33 }
 0x369   :  { %1816 = vrot.lane.b32.xlu1 %v4385_v63, %s2979_s3 }
 0x36a   :  { %v1697_v4 = vadd.f32 %v1659_v18, %v1613_v27 }
 0x36d   :  { %v1485_v1 = vpop.f32.mrf.mxu3 }
 0x36e   :  { %v1521_v23 = vadd.f32 %v1485_v1, %v4298_v49  ;;  %v1743_v8 = vpop.f32.mrf.mxu2  ;;  %v1587_v49 = vpop.f32.mrf.mxu0 }
 0x36f   :  { %v4390_v40 = vadd.f32 %v1743_v8, %v1697_v4  ;;  %v1671_v15 = vpop.f32.mrf.mxu1 }
 0x370   :  { %v1614_v54 = vadd.f32 %v1578_v9, %v1521_v23 }
 0x371   :  { %1818 = vrot.lane.b32.xlu2 %v4390_v40, %s2979_s3 }
 0x372   :  { %v1698_v14 = vadd.f32 %v1662_v17, %v1614_v54 }
 0x375   :  { %v1488_v58 = vpop.f32.mrf.mxu3 }
 0x376   :  { %v1522_v44 = vadd.f32 %v1488_v58, %v4304_v0  ;;  %v1746_v19 = vpop.f32.mrf.mxu2  ;;  %v1590_v10 = vpop.f32.mrf.mxu0 }
 0x377   :  { %v4395_v52 = vadd.f32 %v1746_v19, %v1698_v14  ;;  %v1674_v34 = vpop.f32.mrf.mxu1 }
 0x378   :  { %v1615_v53 = vadd.f32 %v1581_v2, %v1522_v44 }
 0x379   :  { %1820 = vrot.lane.b32.xlu1 %v4395_v52, %s2979_s3 }
 0x37a   :  { %v1699_v47 = vadd.f32 %v1665_v62, %v1615_v53 }
 0x37d   :  { %v1491_v36 = vpop.f32.mrf.mxu3 }
 0x37e   :  { %v1749_v48 = vpop.f32.mrf.mxu2  ;;  %v1593_v13 = vpop.f32.mrf.mxu0  ;;  %v1523_v9 = vadd.f32 %v1491_v36, %v4311_v31 }
 0x37f   :  { %v4399_v59 = vadd.f32 %v1749_v48, %v1699_v47  ;;  %v1677_v61 = vpop.f32.mrf.mxu1 }
 0x380   :  { %v1616_v33 = vadd.f32 %v1584_v3, %v1523_v9 }
 0x381   :  { %1822 = vrot.lane.b32.xlu1 %v4399_v59, %s2979_s3 }
 0x382   :  { %v1700_v2 = vadd.f32 %v1668_v50, %v1616_v33 }
 0x385   :  { %v1494_v56 = vpop.f32.mrf.mxu3 }
 0x386   :  { %v1524_v0 = vadd.f32 %v1494_v56, %v4319_v46  ;;  %v1752_v6 = vpop.f32.mrf.mxu2 }
 0x387   :  { %v1680_v43 = vpop.f32.mrf.mxu1  ;;  %v1784_v4 = vadd.f32 %v1752_v6, %v1700_v2 }
 0x388   :  { %v1617_v51 = vadd.f32 %v1587_v49, %v1524_v0 }
 0x38a   :  { %v1701_v5 = vadd.f32 %v1671_v15, %v1617_v51 }
 0x38d   :  { %v1497_v29 = vpop.f32.mrf.mxu3 }
 0x38e   :  { %v1525_v37 = vadd.f32 %v1497_v29, %v4328_v38  ;;  %v1755_v55 = vpop.f32.mrf.mxu2  ;;  %v1596_v38 = vpop.f32.mrf.mxu0 }
 0x38f   :  { %v4405_v42 = vadd.f32 %v1755_v55, %v1701_v5  ;;  %v1683_v8 = vpop.f32.mrf.mxu1 }
 0x390   :  { %v1618_v22 = vadd.f32 %v1590_v10, %v1525_v37 }
 0x391   :  { %1826 = vrot.lane.b32.xlu1 %v4405_v42, %s2979_s3 }
 0x392   :  { %v1702_v18 = vadd.f32 %v1674_v34, %v1618_v22 }
 0x395   :  { %v1500_v16 = vpop.f32.mrf.mxu3 }
 0x396   :  { %v1526_v46 = vadd.f32 %v1500_v16, %v4334_v12  ;;  %v1758_v39 = vpop.f32.mrf.mxu2  ;;  %v1599_v41 = vpop.f32.mrf.mxu0 }
 0x397   :  { %v4410_v30 = vadd.f32 %v1758_v39, %v1702_v18  ;;  %v1686_v44 = vpop.f32.mrf.mxu1 }
 0x398   :  { %v1619_v20 = vadd.f32 %v1593_v13, %v1526_v46 }
 0x399   :  { %1828 = vrot.lane.b32.xlu2 %v4410_v30, %s2979_s3 }
 0x39a   :  { %v1703_v25 = vadd.f32 %v1677_v61, %v1619_v20 }
 0x39d   :  { %v1503_v60 = vpop.f32.mrf.mxu3 }
 0x39e   :  { %v1527_v17 = vadd.f32 %v1503_v60, %v4341_v45  ;;  %v1761_v57 = vpop.f32.mrf.mxu2  ;;  %v1602_v58 = vpop.f32.mrf.mxu0 }
 0x39f   :  { %v4416_v28 = vadd.f32 %v1761_v57, %v1703_v25  ;;  %v1689_v47 = vpop.f32.mrf.mxu1 }
 0x3a0   :  { %v1620_v12 = vadd.f32 %v1596_v38, %v1527_v17 }
 0x3a1   :  { %1830 = vrot.lane.b32.xlu2 %v4416_v28, %s2979_s3 }
 0x3a2   :  { %v1704_v62 = vadd.f32 %v1680_v43, %v1620_v12 }
 0x3a3   :  { %v1809_v5 = vpop.permute.xlu2 %1808 }
 0x3a4   :  { %v1856_v37 = vmax.f32 %v4365_v32, %v1809_v5 }
 0x3a5   :  { %v1506_v27 = vpop.f32.mrf.mxu3 }
 0x3a6   :  { %v1528_v1 = vadd.f32 %v1506_v27, %v4350_v35  ;;  %v1764_v31 = vpop.f32.mrf.mxu2  ;;  %v1605_v49 = vpop.f32.mrf.mxu0 }
 0x3a7   :  { %v4421_v23 = vadd.f32 %v1764_v31, %v1704_v62 }
 0x3a8   :  { %v1621_v45 = vadd.f32 %v1599_v41, %v1528_v1  ;;  %v4498_v41 = vld [vmem:[%s5030_s4] ss:$0 sm:$0xff]  ;;  %s2982_s4 = smov 32  }
 0x3a9   :  { %1824 = vrot.lane.b32.xlu2 %v1784_v4, %s2979_s3  ;;  %1832 = vrot.lane.b32.xlu1 %v4421_v23, %s2979_s3 }
 0x3aa   :  { %v1705_v3 = vadd.f32 %v1683_v8, %v1621_v45 }
 0x3ad   :  { %v1509_v54 = vpop.f32.mrf.mxu3 }
 0x3ae   :  { %v1767_v14 = vpop.f32.mrf.mxu2  ;;  %v1529_v48 = vadd.f32 %v1509_v54, %v4358_v26 }
 0x3af   :  { %v1789_v50 = vadd.f32 %v1767_v14, %v1705_v3  ;;  %v2980_v3 = vmov 1983009808  }
 0x3b0   :  { %v1622_v0 = vadd.f32 %v1602_v58, %v1529_v48  ;;  %v1994_v58 = vunpack.c.l.s4 %v2980_v3 }
 0x3b1   :  { %1834 = vrot.lane.b32.xlu0 %v1789_v50, %s2979_s3 }
 0x3b2   :  { %v1706_v34 = vadd.f32 %v1686_v44, %v1622_v0  ;;  %v4506_v48 = vunpack.c.0.s8 %v1994_v58 }
 0x3b5   :  { %v1512_v35 = vpop.f32.mrf.mxu3 }
 0x3b6   :  { %v1530_v19 = vadd.f32 %v1512_v35, %v4362_v21  ;;  %v1770_v53 = vpop.f32.mrf.mxu2 }
 0x3b7   :  { %v1790_v21 = vadd.f32 %v1770_v53, %v1706_v34 }
 0x3b8   :  { %v1623_v36 = vadd.f32 %v1605_v49, %v1530_v19 }
 0x3ba   :  { %v1707_v15 = vadd.f32 %v1689_v47, %v1623_v36 }
 0x3be   :  { %v1773_v56 = vpop.f32.mrf.mxu2 }
 0x3bf   :  { %v1791_v10 = vadd.f32 %v1773_v56, %v1707_v15 }
 0x3c1   :  { %1838 = vrot.lane.b32.xlu0 %v1791_v10, %s2979_s3 }
 0x3c3   :  { %v1811_v6 = vpop.permute.xlu0 %1810 }
 0x3c4   :  { %v4431_v51 = vmax.f32 %v4370_v24, %v1811_v6 }
 0x3c6   :  { %1890 = vrot.lane.b32.xlu1 %v4431_v51, %s2978_s27 }
 0x3c9   :  { %1836 = vrot.lane.b32.xlu0 %v1790_v21, %s2979_s3 }
 0x3cb   :  { %v1813_v29 = vpop.permute.xlu0 %1812  ;;  %v1819_v24 = vpop.permute.xlu2 %1818 }
 0x3cc   :  { %v1858_v26 = vmax.f32 %v4375_v7, %v1813_v29  ;;  %v4446_v22 = vmax.f32 %v4390_v40, %v1819_v24 }
 0x3ce   :  { %1892 = vrot.lane.b32.xlu1 %v1858_v26, %s2978_s27 }
 0x3d1   :  { %1888 = vrot.lane.b32.xlu0 %v1856_v37, %s2978_s27 }
 0x3d3   :  { %v1815_v55 = vpop.permute.xlu0 %1814 }
 0x3d4   :  { %v4441_v13 = vmax.f32 %v4380_v11, %v1815_v55 }
 0x3d6   :  { %1894 = vrot.lane.b32.xlu1 %v4441_v13, %s2978_s27 }
 0x3d9   :  { %1898 = vrot.lane.b32.xlu0 %v4446_v22, %s2978_s27 }
 0x3db   :  { %v1817_v7 = vpop.permute.xlu1 %1816 }
 0x3dc   :  { %v1860_v61 = vmax.f32 %v4385_v63, %v1817_v7 }
 0x3de   :  { %1896 = vrot.lane.b32.xlu2 %v1860_v61, %s2978_s27 }
 0x3eb   :  { %v1821_v32 = vpop.permute.xlu1 %1820 }
 0x3ec   :  { %v1862_v16 = vmax.f32 %v4395_v52, %v1821_v32 }
 0x3ee   :  { %1900 = vrot.lane.b32.xlu2 %v1862_v16, %s2978_s27 }
 0x3f3   :  { %v1823_v11 = vpop.permute.xlu1 %1822  ;;  %v1829_v18 = vpop.permute.xlu2 %1828 }
 0x3f4   :  { %v4455_v46 = vmax.f32 %v4399_v59, %v1823_v11  ;;  %v4458_v40 = vmax.f32 %v4410_v30, %v1829_v18 }
 0x3f6   :  { %1902 = vrot.lane.b32.xlu2 %v4455_v46, %s2978_s27  ;;  %1908 = vrot.lane.b32.xlu0 %v4458_v40, %s2978_s27 }
 0x3fb   :  { %v1831_v63 = vpop.permute.xlu2 %1830 }
 0x3fc   :  { %v4465_v39 = vmax.f32 %v4416_v28, %v1831_v63 }
 0x3fe   :  { %1910 = vrot.lane.b32.xlu0 %v4465_v39, %s2978_s27 }
 0x403   :  { %v1827_v52 = vpop.permute.xlu1 %1826  ;;  %v1825_v20 = vpop.permute.xlu2 %1824 }
 0x404   :  { %v4470_v59 = vmax.f32 %v4405_v42, %v1827_v52  ;;  %v4472_v30 = vmax.f32 %v1784_v4, %v1825_v20 }
 0x406   :  { %1906 = vrot.lane.b32.xlu2 %v4470_v59, %s2978_s27  ;;  %1904 = vrot.lane.b32.xlu0 %v4472_v30, %s2978_s27 }
 0x41b   :  { %v1833_v38 = vpop.permute.xlu1 %1832 }
 0x41c   :  { %v4479_v9 = vmax.f32 %v4421_v23, %v1833_v38 }
 0x41e   :  { %1912 = vrot.lane.b32.xlu2 %v4479_v9, %s2978_s27 }
 0x423   :  { %v1835_v60 = vpop.permute.xlu0 %1834 }
 0x424   :  { %v4483_v25 = vmax.f32 %v1789_v50, %v1835_v60 }
 0x426   :  { %1914 = vrot.lane.b32.xlu1 %v4483_v25, %s2978_s27 }
 0x433   :  { %v1839_v42 = vpop.permute.xlu0 %1838 }
 0x434   :  { %v4487_v43 = vmax.f32 %v1791_v10, %v1839_v42 }
 0x436   :  { %1918 = vrot.lane.b32.xlu1 %v4487_v43, %s2978_s27 }
 0x438   :  { %v1891_v17 = vpop.permute.xlu1 %1890  ;;  %v1897_v33 = vpop.permute.xlu2 %1896 }
 0x439   :  { %v1940_v27 = vmax.f32 %v1860_v61, %v1897_v33  ;;  %v1937_v62 = vmax.f32 %v4431_v51, %v1891_v17 }
 0x43b   :  { %v1837_v57 = vpop.permute.xlu0 %1836  ;;  %v1960_v8 = vadd.f32 %v4498_v41, %v1940_v27  ;;  %v1957_v45 = vadd.f32 %v4498_v41, %v1937_v62 }
 0x43c   :  { %v4491_v28 = vmax.f32 %v1790_v21, %v1837_v57 }
 0x43d   :  { %v1976_v49 = vmax.f32 %v1960_v8, 0.0  ;;  %v1973_v36 = vmax.f32 %v1957_v45, 0.0 }
 0x43e   :  { %1916 = vrot.lane.b32.xlu1 %v4491_v28, %s2978_s27 }
 0x43f   :  { %v2015_v5 = vrot.slane %v1976_v49, 4 }
 0x440   :  { %v1893_v12 = vpop.permute.xlu1 %1892 }
 0x441   :  { %v1938_v2 = vmax.f32 %v1858_v26, %v1893_v12  ;;  %v2003_v26 = vrot.slane %v1973_v36, 4 }
 0x443   :  { %v1958_v1 = vadd.f32 %v4498_v41, %v1938_v2  ;;  %v1889_v31 = vpop.permute.xlu0 %1888 }
 0x444   :  { %v1936_v4 = vmax.f32 %v1856_v37, %v1889_v31 }
 0x445   :  { %v1974_v23 = vmax.f32 %v1958_v1, 0.0 }
 0x446   :  { %v1956_v54 = vadd.f32 %v4498_v41, %v1936_v4 }
 0x447   :  { %v1988_v14 = vrot.slane %v1974_v23, 4 }
 0x448   :  { %v1972_v50 = vmax.f32 %v1956_v54, 0.0  ;;  %v1901_v44 = vpop.permute.xlu2 %1900  ;;  %v1895_v35 = vpop.permute.xlu1 %1894 }
 0x449   :  { %v1942_v19 = vmax.f32 %v1862_v16, %v1901_v44  ;;  %v1939_v53 = vmax.f32 %v4441_v13, %v1895_v35  ;;  %v2981_v13 = vmov 1934713408  }
 0x44a   :  { %v1991_v47 = vrot.slane %v1972_v50, 4  ;;  %v1990_v0 = vsel %vm1989_vm1, %v1988_v14, %v1972_v50  ;;  %v2042_v7 = vunpack.c.l.s4 %v2981_v13 }
 0x44b   :  { %v1962_v15 = vadd.f32 %v4498_v41, %v1942_v19  ;;  %v1959_v56 = vadd.f32 %v4498_v41, %v1939_v53  ;;  %v1899_v10 = vpop.permute.xlu0 %1898  ;;  %v1996_v55 = vperm.slane %v1990_v0, %v4506_v48 }
 0x44c   :  { %v1992_v6 = vsel %vm1989_vm1, %v1974_v23, %v1991_v47  ;;  %v1941_v51 = vmax.f32 %v4446_v22, %v1899_v10  ;;  %v4523_v17 = vunpack.c.0.s8 %v2042_v7 }
 0x44d   :  { %v2000_v34 = vperm.slane %v1992_v6, %v4506_v48  ;;  %v1978_v21 = vmax.f32 %v1962_v15, 0.0  ;;  %v1975_v29 = vmax.f32 %v1959_v56, 0.0  ;;  %v2039_v42 = vrot.slane %v1996_v55, 4 }
 0x44e   :  { %v1961_v37 = vadd.f32 %v4498_v41, %v1941_v51 }
 0x44f   :  { %v2013_v24 = vrot.slane %v1978_v21, 4  ;;  %v2001_v61 = vrot.slane %v1975_v29, 4  ;;  %v2051_v32 = vrot.slane %v2000_v34, 4  ;;  %v2016_v16 = vsel %vm1989_vm1, %v1978_v21, %v2015_v5 }
 0x450   :  { %v2004_v11 = vsel %vm1989_vm1, %v1975_v29, %v2003_v26  ;;  %v1903_v22 = vpop.permute.xlu2 %1902  ;;  %v1977_v52 = vmax.f32 %v1961_v37, 0.0  ;;  %v2024_v12 = vperm.slane %v2016_v16, %v4506_v48 }
 0x451   :  { %v2002_v18 = vsel %vm1989_vm1, %v2001_v61, %v1973_v36  ;;  %v2012_v63 = vperm.slane %v2004_v11, %v4506_v48  ;;  %v1943_v20 = vmax.f32 %v4455_v46, %v1903_v22  ;;  %v2014_v38 = vsel %vm1989_vm1, %v2013_v24, %v1976_v49 }
 0x452   :  { %v2008_v60 = vperm.slane %v2002_v18, %v4506_v48  ;;  %v2020_v62 = vperm.slane %v2014_v38, %v4506_v48  ;;  %v2027_v46 = vrot.slane %v1977_v52, 4  ;;  %v2075_v54 = vrot.slane %v2024_v12, 4 }
 0x453   :  { %v2049_v57 = vrot.slane %v2012_v63, 4  ;;  %v1963_v33 = vadd.f32 %v4498_v41, %v1943_v20  ;;  %v2052_v27 = vsel %vm1989_vm1, %v2012_v63, %v2051_v32 }
 0x454   :  { %v2037_v2 = vrot.slane %v2008_v60, 4  ;;  %v2040_v1 = vsel %vm1989_vm1, %v2008_v60, %v2039_v42  ;;  %v2060_v23 = vperm.slane %v2052_v27, %v4523_v17  ;;  %v2063_v50 = vrot.slane %v2020_v62, 4 }
 0x455   :  { %v1979_v31 = vmax.f32 %v1963_v33, 0.0  ;;  %v2050_v4 = vsel %vm1989_vm1, %v2049_v57, %v2000_v34  ;;  %v2048_v58 = vperm.slane %v2040_v1, %v4523_v17 }
 0x456   :  { %v2038_v3 = vsel %vm1989_vm1, %v2037_v2, %v1996_v55  ;;  %v2056_v35 = vperm.slane %v2050_v4, %v4523_v17  ;;  %v2099_v47 = vrot.slane %v2060_v23, 4 }
 0x457   :  { %v2025_v8 = vrot.slane %v1979_v31, 4  ;;  %v2028_v45 = vsel %vm1989_vm1, %v1979_v31, %v2027_v46  ;;  %v2044_v36 = vperm.slane %v2038_v3, %v4523_v17  ;;  %v2091_v56 = vrot.slane %v2048_v58, 4 }
 0x458   :  { %v2036_v14 = vperm.slane %v2028_v45, %v4506_v48  ;;  %v2095_v5 = vrot.slane %v2056_v35, 4 }
 0x459   :  { %v2026_v44 = vsel %vm1989_vm1, %v2025_v8, %v1977_v52  ;;  %v2087_v61 = vrot.slane %v2044_v36, 4 }
 0x45a   :  { %v2032_v19 = vperm.slane %v2026_v44, %v4506_v48  ;;  %v2073_v53 = vrot.slane %v2036_v14, 4  ;;  %v2076_v49 = vsel %vm1989_vm1, %v2036_v14, %v2075_v54 }
 0x45b   :  { %v2084_v15 = vperm.slane %v2076_v49, %v4523_v17 }
 0x45c   :  { %v2061_v10 = vrot.slane %v2032_v19, 4  ;;  %v2064_v0 = vsel %vm1989_vm1, %v2032_v19, %v2063_v50  ;;  %v2074_v6 = vsel %vm1989_vm1, %v2073_v53, %v2024_v12 }
 0x45d   :  { %v2072_v51 = vperm.slane %v2064_v0, %v4523_v17  ;;  %v2080_v34 = vperm.slane %v2074_v6, %v4523_v17  ;;  %v2097_v21 = vrot.slane %v2084_v15, 4  ;;  %v2100_v29 = vsel %vm1989_vm1, %v2084_v15, %v2099_v47 }
 0x45e   :  { %v2062_v26 = vsel %vm1989_vm1, %v2061_v10, %v2020_v62  ;;  %v2249_v37 = vrot.slane %v2100_v29, 4 }
 0x45f   :  { %v2068_v55 = vperm.slane %v2062_v26, %v4523_v17  ;;  %v2089_v24 = vrot.slane %v2072_v51, 4  ;;  %v2092_v13 = vsel %vm1989_vm1, %v2072_v51, %v2091_v56  ;;  %v2093_v7 = vrot.slane %v2080_v34, 4 }
 0x460   :  { %v2098_v32 = vsel %vm1989_vm1, %v2097_v21, %v2060_v23  ;;  %v2096_v16 = vsel %vm1989_vm1, %v2080_v34, %v2095_v5  ;;  %v2225_v11 = vrot.slane %v2092_v13, 4 }
 0x461   :  { %v2085_v22 = vrot.slane %v2068_v55, 4  ;;  %v2090_v18 = vsel %vm1989_vm1, %v2089_v24, %v2048_v58  ;;  %v2237_v63 = vrot.slane %v2098_v32, 4  ;;  %v2088_v52 = vsel %vm1989_vm1, %v2068_v55, %v2087_v61  ;;  %v1907_v24 = vpop.permute.xlu2 %1906 }
 0x462   :  { %v2094_v20 = vsel %vm1989_vm1, %v2093_v7, %v2056_v35  ;;  %v2213_v38 = vrot.slane %v2090_v18, 4  ;;  %v2226_v42 = vsel %vm1989_vm1, %v2225_v11, %v2088_v52  ;;  %v2250_v57 = vsel %vm1989_vm1, %v2249_v37, %v2096_v16 }
 0x463   :  { %v2086_v60 = vsel %vm1989_vm1, %v2085_v22, %v2044_v36  ;;  %v2227_v12 = vrot.slane %v2088_v52, 4  ;;  %v4560_v2 = vperm.slane %v2226_v42, %v4506_v48  ;;  %v2238_v27 = vsel %vm1989_vm1, %v2237_v63, %v2094_v20  ;;  %v2514_v52 = vld [vmem:[%s5031_s5 + $0x78] sm:$0xff] }
 0x464   :  { %v2214_v33 = vsel %vm1989_vm1, %v2213_v38, %v2086_v60  ;;  %v2215_v62 = vrot.slane %v2086_v60, 4  ;;  %v2239_v46 = vrot.slane %v2094_v20, 4  ;;  %v4567_v31 = vperm.slane %v2238_v27, %v4506_v48  ;;  %2567 = vmatpush.msra.mxu3 %v2514_v52 }
 0x465   :  { %v4564_v1 = vperm.slane %v2214_v33, %v4506_v48  ;;  %v2256_v4 = vperm.slane %v2250_v57, %v4506_v48  ;;  %v2261_v23 = vrot.slane %v4560_v2, 4  ;;  %v2251_v8 = vrot.slane %v2096_v16, 4 }
 0x466   :  { %v2228_v54 = vsel %vm1989_vm1, %v2092_v13, %v2227_v12  ;;  %v2216_v14 = vsel %vm1989_vm1, %v2090_v18, %v2215_v62  ;;  %v2240_v50 = vsel %vm1989_vm1, %v2098_v32, %v2239_v46  ;;  %v1945_v7 = vmax.f32 %v4470_v59, %v1907_v24  ;;  %v2513_v59 = vld [vmem:[%s5031_s5 + $0x70] sm:$0xff] }
 0x467   :  { %v2285_v45 = vrot.slane %v2256_v4, 4  ;;  %v2262_v3 = vsel %vm1989_vm1, %v2261_v23, %v4564_v1  ;;  %v4582_v35 = vperm.slane %v2228_v54, %v4506_v48  ;;  %v2252_v53 = vsel %vm1989_vm1, %v2100_v29, %v2251_v8  ;;  %2568 = vmatpush.msra.mxu3 %v2513_v59 }
 0x468   :  { %v4585_v19 = vperm.slane %v2262_v3, %v4523_v17  ;;  %v4590_v36 = vperm.slane %v2216_v14, %v4506_v48  ;;  %v4593_v47 = vperm.slane %v2240_v50, %v4506_v48  ;;  %v4596_v15 = vperm.slane %v2252_v53, %v4506_v48  ;;  %v1909_v26 = vpop.permute.xlu0 %1908 }
 0x469   :  { %v2286_v58 = vsel %vm1989_vm1, %v2285_v45, %v4567_v31  ;;  %v2273_v56 = vrot.slane %v4582_v35, 4  ;;  %v1946_v32 = vmax.f32 %v4458_v40, %v1909_v26  ;;  %v1965_v11 = vadd.f32 %v4498_v41, %v1945_v7  ;;  %v2546_v7 = vld [vmem:[%s5031_s5 + $0x178] sm:$0xff] }
 0x46a   :  { %v4579_v44 = vperm.slane %v2286_v58, %v4523_v17  ;;  %v2297_v10 = vrot.slane %v4596_v15, 4  ;;  %v2287_v42 = vrot.slane %v4567_v31, 4  ;;  %2607 = vmatpush.msrb.mxu1 %v2546_v7 }
 0x46b   :  { %v2274_v6 = vsel %vm1989_vm1, %v2273_v56, %v4590_v36  ;;  %v1966_v63 = vadd.f32 %v4498_v41, %v1946_v32 }
 0x46c   :  { %v2309_v49 = vrot.slane %v4579_v44, 4  ;;  %v2298_v51 = vsel %vm1989_vm1, %v2297_v10, %v4593_v47  ;;  %v4609_v34 = vperm.slane %v2274_v6, %v4523_v17  ;;  %v2288_v54 = vsel %vm1989_vm1, %v2256_v4, %v2287_v42 }
 0x46d   :  { %v4612_v21 = vperm.slane %v2298_v51, %v4523_v17  ;;  %v1982_v38 = vmax.f32 %v1966_v63, 0.0  ;;  %v2296_v56 = vperm.slane %v2288_v54, %v4523_v17  ;;  %v2275_v63 = vrot.slane %v4590_v36, 4 }
 0x46e   :  { %v4602_v0 = vsel %vm1989_vm1, %v2309_v49, %v4585_v19 }
 0x46f   :  { %v2317_v29 = vrot.slane %v4612_v21, 4  ;;  %v2101_v46 = vrot.slane %v1982_v38, 4 }
 0x470   :  { %v1911_v37 = vpop.permute.xlu0 %1910 }
 0x471   :  { %v4617_v5 = vsel %vm1989_vm1, %v2317_v29, %v4609_v34  ;;  %v1947_v61 = vmax.f32 %v4465_v39, %v1911_v37  ;;  %v2530_v37 = vld [vmem:[%s5031_s5 + $0xf8] sm:$0xff] }
 0x472   :  { %2587 = vmatpush.msra.mxu0 %v2530_v37 }
 0x473   :  { %v1967_v22 = vadd.f32 %v4498_v41, %v1947_v61  ;;  %v2512_v61 = vld [vmem:[%s5031_s5 + $0x68] sm:$0xff] }
 0x474   :  { %2569 = vmatpush.msra.mxu3 %v2512_v61 }
 0x475   :  { %v1983_v20 = vmax.f32 %v1967_v22, 0.0  ;;  %v2313_v22 = vrot.slane %v2296_v56, 4 }
 0x477   :  { %v2113_v27 = vrot.slane %v1983_v20, 4 }
 0x478   :  { %v1905_v55 = vpop.permute.xlu0 %1904  ;;  %v1913_v60 = vpop.permute.xlu2 %1912 }
 0x479   :  { %v1944_v13 = vmax.f32 %v4472_v30, %v1905_v55  ;;  %v1981_v30 = vmax.f32 %v1965_v11, 0.0  ;;  %v1948_v23 = vmax.f32 %v4479_v9, %v1913_v60 }
 0x47b   :  { %v1964_v16 = vadd.f32 %v4498_v41, %v1944_v13  ;;  %v2115_v12 = vrot.slane %v1981_v30, 4  ;;  %v2114_v50 = vsel %vm1989_vm1, %v2113_v27, %v1981_v30  ;;  %v1968_v53 = vadd.f32 %v4498_v41, %v1948_v23 }
 0x47c   :  { %v2120_v10 = vperm.slane %v2114_v50, %v4506_v48  ;;  %v2311_v13 = vrot.slane %v4585_v19, 4  ;;  %v2276_v27 = vsel %vm1989_vm1, %v4582_v35, %v2275_v63 }
 0x47d   :  { %v1980_v39 = vmax.f32 %v1964_v16, 0.0  ;;  %v2116_v45 = vsel %vm1989_vm1, %v1983_v20, %v2115_v12 }
 0x47e   :  { %v4675_v60 = vsel %vm1989_vm1, %v4579_v44, %v2311_v13 }
 0x47f   :  { %v2103_v57 = vrot.slane %v1980_v39, 4  ;;  %v2102_v3 = vsel %vm1989_vm1, %v2101_v46, %v1980_v39 }
 0x480   :  { %v2108_v49 = vperm.slane %v2102_v3, %v4506_v48  ;;  %v2511_v3 = vld [vmem:[%s5031_s5 + $0x60] sm:$0xff] }
 0x481   :  { %v2104_v31 = vsel %vm1989_vm1, %v1982_v38, %v2103_v57  ;;  %2570 = vmatpush.msra.mxu3 %v2511_v3 }
 0x482   :  { %v2112_v4 = vperm.slane %v2104_v31, %v4506_v48  ;;  %v2151_v16 = vrot.slane %v2108_v49, 4  ;;  %v2528_v31 = vld [vmem:[%s5031_s5 + $0xe8] sm:$0xff] }
 0x484   :  { %v2163_v11 = vrot.slane %v2112_v4, 4  ;;  %v2152_v42 = vsel %vm1989_vm1, %v2120_v10, %v2151_v16  ;;  %v2508_v16 = vld [vmem:[%s5031_s5 + $0x48] sm:$0xff] }
 0x498   :  { %v1915_v18 = vpop.permute.xlu1 %1914 }
 0x499   :  { %v1949_v40 = vmax.f32 %v4483_v25, %v1915_v18  ;;  %v2263_v25 = vrot.slane %v4564_v1, 4  ;;  %v2124_v1 = vperm.slane %v2116_v45, %v4506_v48  ;;  %v2149_v18 = vrot.slane %v2120_v10, 4 }
 0x49b   :  { %v1969_v33 = vadd.f32 %v4498_v41, %v1949_v40  ;;  %v2161_v32 = vrot.slane %v2124_v1, 4  ;;  %v2299_v40 = vrot.slane %v4593_v47, 4  ;;  %v2150_v20 = vsel %vm1989_vm1, %v2149_v18, %v2108_v49 }
 0x49c   :  { %v4688_v44 = vperm.slane %v2150_v20, %v4523_v17 }
 0x49d   :  { %v1985_v58 = vmax.f32 %v1969_v33, 0.0  ;;  %v2162_v52 = vsel %vm1989_vm1, %v2161_v32, %v2112_v4  ;;  %v2300_v23 = vsel %vm1989_vm1, %v4596_v15, %v2299_v40  ;;  %v2545_v15 = vld [vmem:[%s5031_s5 + $0x170] sm:$0xff]  ;;  %v2542_v32 = vld [vmem:[%s5031_s5 + $0x158] sm:$0xff] }
 0x49e   :  { %v2168_v33 = vperm.slane %v2162_v52, %v4523_v17  ;;  %2608 = vmatpush.msrb.mxu1 %v2545_v15  ;;  %v4731_v10 = vperm.slane %v2300_v23, %v4523_v17  ;;  %v2541_v40 = vld [vmem:[%s5031_s5 + $0x150] sm:$0xff]  ;;  %v2523_v15 = vld [vmem:[%s5031_s5 + $0xc0] sm:$0xff] }
 0x49f   :  { %v2139_v6 = vrot.slane %v1985_v58, 4 }
 0x4a0   :  { %v2207_v49 = vrot.slane %v2168_v33, 4 }
 0x4a8   :  { %v1919_v62 = vpop.permute.xlu1 %1918 }
 0x4a9   :  { %v1951_v8 = vmax.f32 %v4487_v43, %v1919_v62  ;;  %v2264_v43 = vsel %vm1989_vm1, %v4560_v2, %v2263_v25  ;;  %v1984_v2 = vmax.f32 %v1968_v53, 0.0  ;;  %v4697_v25 = vperm.slane %v2152_v42, %v4523_v17 }
 0x4aa   :  { %v2272_v26 = vperm.slane %v2264_v43, %v4523_v17  ;;  %v2510_v43 = vld [vmem:[%s5031_s5 + $0x58] sm:$0xff] }
 0x4ab   :  { %v1971_v14 = vadd.f32 %v4498_v41, %v1951_v8  ;;  %v2127_v30 = vrot.slane %v1984_v2, 4  ;;  %v2529_v8 = vld [vmem:[%s5031_s5 + $0xf0] sm:$0xff]  ;;  %2571 = vmatpush.msra.mxu3 %v2510_v43 }
 0x4ac   :  { %v2315_v39 = vrot.slane %v2272_v26, 4  ;;  %v4681_v57 = vsel %vm1989_vm1, %v2313_v22, %v2272_v26  ;;  %2588 = vmatpush.msra.mxu0 %v2529_v8 }
 0x4ad   :  { %v1987_v9 = vmax.f32 %v1971_v14, 0.0 }
 0x4ae   :  { %v4704_v54 = vsel %vm1989_vm1, %v2296_v56, %v2315_v39  ;;  %v4728_v56 = vperm.slane %v2276_v27, %v4523_v17  ;;  %2589 = vmatpush.msra.mxu0 %v2528_v31 }
 0x4af   :  { %v2137_v51 = vrot.slane %v1987_v9, 4  ;;  %v2140_v55 = vsel %vm1989_vm1, %v1987_v9, %v2139_v6  ;;  %v2544_v9 = vld [vmem:[%s5031_s5 + $0x168] sm:$0xff]  ;;  %v2543_v6 = vld [vmem:[%s5031_s5 + $0x160] sm:$0xff] }
 0x4b0   :  { %v1917_v29 = vpop.permute.xlu1 %1916  ;;  %v2148_v59 = vperm.slane %v2140_v55, %v4506_v48  ;;  %2609 = vmatpush.msrb.mxu1 %v2544_v9  ;;  %v2526_v55 = vld [vmem:[%s5031_s5 + $0xd8] sm:$0xff] }
 0x4b1   :  { %v1950_v24 = vmax.f32 %v4491_v28, %v1917_v29  ;;  %v2138_v28 = vsel %vm1989_vm1, %v2137_v51, %v1985_v58  ;;  %v2509_v51 = vld [vmem:[%s5031_s5 + $0x50] sm:$0xff]  ;;  %v2199_v29 = vrot.slane %v4688_v44, 4 }
 0x4b2   :  { %v2144_v36 = vperm.slane %v2138_v28, %v4506_v48  ;;  %v2185_v62 = vrot.slane %v2148_v59, 4  ;;  %2610 = vmatpush.msrb.mxu1 %v2543_v6  ;;  %2572 = vmatpush.msra.mxu3 %v2509_v51 }
 0x4b3   :  { %v1970_v19 = vadd.f32 %v4498_v41, %v1950_v24  ;;  %v2164_v41 = vsel %vm1989_vm1, %v2124_v1, %v2163_v11  ;;  %v2527_v1 = vld [vmem:[%s5031_s5 + $0xe0] sm:$0xff]  ;;  %v2203_v11 = vrot.slane %v4697_v25, 4 }
 0x4b4   :  { %v4700_v45 = vperm.slane %v2164_v41, %v4523_v17  ;;  %v2173_v58 = vrot.slane %v2144_v36, 4  ;;  %2590 = vmatpush.msra.mxu0 %v2527_v1  ;;  %2611 = vmatpush.msrb.mxu1 %v2542_v32  ;;  %v2522_v1 = vld [vmem:[%s5031_s5 + $0xb8] sm:$0xff] }
 0x4b5   :  { %v1986_v38 = vmax.f32 %v1970_v19, 0.0  ;;  %v2525_v19 = vld [vmem:[%s5031_s5 + $0xd0] sm:$0xff]  ;;  %2573 = vmatpush.msra.mxu3 %v2508_v16 }
 0x4b6   :  { %v2211_v22 = vrot.slane %v4700_v45, 4  ;;  %2591 = vmatpush.msra.mxu0 %v2526_v55  ;;  %2612 = vmatpush.msrb.mxu1 %v2541_v40 }
 0x4b7   :  { %v2125_v47 = vrot.slane %v1986_v38, 4  ;;  %v2128_v12 = vsel %vm1989_vm1, %v1986_v38, %v2127_v30  ;;  %v2507_v30 = vld [vmem:[%s5031_s5 + $0x40] sm:$0xff] }
 0x4b8   :  { %v2136_v46 = vperm.slane %v2128_v12, %v4506_v48  ;;  %2592 = vmatpush.msra.mxu0 %v2525_v19  ;;  %2574 = vmatpush.msra.mxu3 %v2507_v30 }
 0x4b9   :  { %v2126_v35 = vsel %vm1989_vm1, %v2125_v47, %v1984_v2 }
 0x4ba   :  { %v2132_v14 = vperm.slane %v2126_v35, %v4506_v48  ;;  %v2186_v50 = vsel %vm1989_vm1, %v2185_v62, %v2136_v46  ;;  %v2187_v53 = vrot.slane %v2136_v46, 4  ;;  %v2540_v62 = vld [vmem:[%s5031_s5 + $0x148] sm:$0xff]  ;;  %v2506_v46 = vld [vmem:[%s5031_s5 + $0x38] sm:$0xff] }
 0x4bb   :  { %v2192_v4 = vperm.slane %v2186_v50, %v4523_v17  ;;  %v2505_v50 = vld [vmem:[%s5031_s5 + $0x30] sm:$0xff]  ;;  %2613 = vmatpush.msrb.mxu1 %v2540_v62  ;;  %2575 = vmatpush.msra.mxu3 %v2506_v46  ;;  %v2519_v62 = vld [vmem:[%s5031_s5 + $0xa0] sm:$0xff] }
 0x4bc   :  { %v2174_v26 = vsel %vm1989_vm1, %v2173_v58, %v2132_v14  ;;  %v2175_v37 = vrot.slane %v2132_v14, 4  ;;  %v2188_v2 = vsel %vm1989_vm1, %v2148_v59, %v2187_v53 }
 0x4bd   :  { %v2180_v24 = vperm.slane %v2174_v26, %v4523_v17  ;;  %v2196_v13 = vperm.slane %v2188_v2, %v4523_v17  ;;  %v2205_v7 = vrot.slane %v2192_v4, 4  ;;  %v4748_v61 = vsel %vm1989_vm1, %v2192_v4, %v2207_v49  ;;  %2576 = vmatpush.msra.mxu3 %v2505_v50 }
 0x4be   :  { %v2176_v18 = vsel %vm1989_vm1, %v2144_v36, %v2175_v37  ;;  %v2363_v28 = vrot.slane %v4748_v61, 4  ;;  %v2524_v36 = vld [vmem:[%s5031_s5 + $0xc8] sm:$0xff] }
 0x4bf   :  { %v2184_v63 = vperm.slane %v2176_v18, %v4523_v17  ;;  %v2197_v52 = vrot.slane %v2180_v24, 4  ;;  %v2200_v59 = vsel %vm1989_vm1, %v2180_v24, %v2199_v29  ;;  %v2206_v39 = vsel %vm1989_vm1, %v2205_v7, %v2168_v33  ;;  %2593 = vmatpush.msra.mxu0 %v2524_v36  ;;  %v2538_v29 = vld [vmem:[%s5031_s5 + $0x138] sm:$0xff]  ;;  %v2504_v24 = vld [vmem:[%s5031_s5 + $0x28] sm:$0xff] }
 0x4c0   :  { %v2209_v20 = vrot.slane %v2196_v13, 4  ;;  %v2351_v38 = vrot.slane %v2206_v39, 4  ;;  %v2212_v42 = vsel %vm1989_vm1, %v2196_v13, %v2211_v22  ;;  %v2339_v41 = vrot.slane %v2200_v59, 4  ;;  %v2537_v22 = vld [vmem:[%s5031_s5 + $0x130] sm:$0xff]  ;;  %2577 = vmatpush.msra.mxu3 %v2504_v24 }
 0x4c1   :  { %v2198_v33 = vsel %vm1989_vm1, %v2197_v52, %v4688_v44  ;;  %v2201_v47 = vrot.slane %v2184_v63, 4  ;;  %v2204_v12 = vsel %vm1989_vm1, %v2184_v63, %v2203_v11  ;;  %v2361_v27 = vrot.slane %v2212_v42, 4  ;;  %2594 = vmatpush.msra.mxu0 %v2523_v15  ;;  %v2521_v11 = vld [vmem:[%s5031_s5 + $0xb0] sm:$0xff]  ;;  %v2503_v52 = vld [vmem:[%s5031_s5 + $0x20] sm:$0xff] }
 0x4c2   :  { %v2210_v23 = vsel %vm1989_vm1, %v2209_v20, %v4700_v45  ;;  %v2327_v8 = vrot.slane %v2198_v33, 4  ;;  %v2337_v35 = vrot.slane %v2204_v12, 4  ;;  %v2340_v44 = vsel %vm1989_vm1, %v2204_v12, %v2339_v41  ;;  %v2539_v45 = vld [vmem:[%s5031_s5 + $0x140] sm:$0xff]  ;;  %v2520_v20 = vld [vmem:[%s5031_s5 + $0xa8] sm:$0xff]  ;;  %2578 = vmatpush.msra.mxu3 %v2503_v52  ;;  %v2533_v52 = vld [vmem:[%s5031_s5 + $0x110] sm:$0xff] }
 0x4c3   :  { %v2202_v3 = vsel %vm1989_vm1, %v2201_v47, %v4697_v25  ;;  %v2348_v31 = vperm.slane %v2340_v44, %v4506_v48  ;;  %v2349_v58 = vrot.slane %v2210_v23, 4  ;;  %v2352_v14 = vsel %vm1989_vm1, %v2210_v23, %v2351_v38  ;;  %2614 = vmatpush.msrb.mxu1 %v2539_v45  ;;  %2595 = vmatpush.msra.mxu0 %v2522_v1 }
 0x4c4   :  { %v2325_v53 = vrot.slane %v2202_v3, 4  ;;  %v2328_v9 = vsel %vm1989_vm1, %v2202_v3, %v2327_v8  ;;  %v2360_v43 = vperm.slane %v2352_v14, %v4506_v48  ;;  %v2364_v25 = vsel %vm1989_vm1, %v2212_v42, %v2363_v28 }
 0x4c5   :  { %v2336_v49 = vperm.slane %v2328_v9, %v4506_v48  ;;  %v2372_v4 = vperm.slane %v2364_v25, %v4506_v48  ;;  %v2385_v6 = vrot.slane %v2348_v31, 4  ;;  %v2338_v51 = vsel %vm1989_vm1, %v2337_v35, %v2200_v59  ;;  %2615 = vmatpush.msrb.mxu1 %v2538_v29  ;;  %2596 = vmatpush.msra.mxu0 %v2521_v11  ;;  %v2562_v11 = vld [vmem:[%s5031_s5 + $0x1f8] sm:$0xff] }
 0x4c6   :  { %v2411_v26 = vrot.slane %v2360_v43, 4  ;;  %v2326_v37 = vsel %vm1989_vm1, %v2325_v53, %v2198_v33  ;;  %v2344_v2 = vperm.slane %v2338_v51, %v4506_v48  ;;  %v2350_v55 = vsel %vm1989_vm1, %v2349_v58, %v2206_v39 }
 0x4c7   :  { %v2387_v13 = vrot.slane %v2336_v49, 4  ;;  %v2386_v7 = vsel %vm1989_vm1, %v2385_v6, %v2336_v49  ;;  %v2409_v32 = vrot.slane %v2372_v4, 4  ;;  %v2332_v16 = vperm.slane %v2326_v37, %v4506_v48  ;;  %2616 = vmatpush.msrb.mxu1 %v2537_v22  ;;  %2597 = vmatpush.msra.mxu0 %v2520_v20  ;;  %v2561_v22 = vld [vmem:[%s5031_s5 + $0x1f0] sm:$0xff]  ;;  %v2555_v20 = vld [vmem:[%s5031_s5 + $0x1c0] sm:$0xff] }
 0x4c8   :  { %v2412_v18 = vsel %vm1989_vm1, %v2372_v4, %v2411_v26  ;;  %v2392_v28 = vperm.slane %v2386_v7, %v4523_v17  ;;  %v2356_v19 = vperm.slane %v2350_v55, %v4506_v48  ;;  %v2362_v63 = vsel %vm1989_vm1, %v2361_v27, %v4748_v61  ;;  %v2536_v61 = vld [vmem:[%s5031_s5 + $0x128] sm:$0xff] }
 0x4c9   :  { %v2388_v59 = vsel %vm1989_vm1, %v2348_v31, %v2387_v13  ;;  %v2420_v39 = vperm.slane %v2412_v18, %v4523_v17  ;;  %v2410_v40 = vsel %vm1989_vm1, %v2409_v32, %v2360_v43  ;;  %v2368_v30 = vperm.slane %v2362_v63, %v4506_v48  ;;  %v2502_v48 = vld [vmem:[%s5031_s5 + $0x18] sm:$0xff]  ;;  %2617 = vmatpush.msrb.mxu1 %v2536_v61  ;;  %v2535_v32 = vld [vmem:[%s5031_s5 + $0x120] sm:$0xff] }
 0x4ca   :  { %v2396_v38 = vperm.slane %v2388_v59, %v4523_v17  ;;  %v2416_v42 = vperm.slane %v2410_v40, %v4523_v17  ;;  %v2431_v41 = vrot.slane %v2392_v28, 4  ;;  %v2375_v36 = vrot.slane %v2332_v16, 4  ;;  %2579 = vmatpush.msra.mxu3 %v2502_v48  ;;  %2598 = vmatpush.msra.mxu0 %v2519_v62  ;;  %v2534_v18 = vld [vmem:[%s5031_s5 + $0x118] sm:$0xff]  ;;  %v2559_v63 = vld [vmem:[%s5031_s5 + $0x1e0] sm:$0xff]  ;;  %v2516_v59 = vld [vmem:[%s5031_s5 + $0x88] sm:$0xff] }
 0x4cb   :  { %v2433_v33 = vrot.slane %v2420_v39, 4  ;;  %v2399_v47 = vrot.slane %v2356_v19, 4  ;;  %v2373_v12 = vrot.slane %v2344_v2, 4  ;;  %v2397_v27 = vrot.slane %v2368_v30, 4  ;;  %2618 = vmatpush.msrb.mxu1 %v2535_v32  ;;  %v2557_v40 = vld [vmem:[%s5031_s5 + $0x1d0] sm:$0xff]  ;;  %v2554_v61 = vld [vmem:[%s5031_s5 + $0x1b8] sm:$0xff] }
 0x4cc   :  { %v2429_v46 = vrot.slane %v2416_v42, 4  ;;  %v2432_v23 = vsel %vm1989_vm1, %v2416_v42, %v2431_v41  ;;  %v2435_v8 = vrot.slane %v2396_v38, 4  ;;  %v2376_v35 = vsel %vm1989_vm1, %v2344_v2, %v2375_v36  ;;  %v2532_v42 = vld [vmem:[%s5031_s5 + $0x108] sm:$0xff]  ;;  %v2551_v36 = vld [vmem:[%s5031_s5 + $0x1a0] sm:$0xff] }
 0x4cd   :  { %v2434_v44 = vsel %vm1989_vm1, %v2433_v33, %v2396_v38  ;;  %v2939_v15 = vpack.i.bf16 %v2432_v23, %v4675_v60  ;;  %v2384_v3 = vperm.slane %v2376_v35, %v4523_v17  ;;  %v2400_v31 = vsel %vm1989_vm1, %v2368_v30, %v2399_v47  ;;  %2619 = vmatpush.msrb.mxu1 %v2534_v18  ;;  %v2556_v30 = vld [vmem:[%s5031_s5 + $0x1c8] sm:$0xff]  ;;  %v2553_v38 = vld [vmem:[%s5031_s5 + $0x1b0] sm:$0xff]  ;;  %v2515_v48 = vld [vmem:[%s5031_s5 + $0x80] sm:$0xff] }
 0x4ce   :  { %v2944_v58 = vpack.i.bf16 %v2434_v44, %v4681_v57  ;;  %v2436_v14 = vsel %vm1989_vm1, %v2420_v39, %v2435_v8  ;;  %v2408_v45 = vperm.slane %v2400_v31, %v4523_v17  ;;  %v2374_v50 = vsel %vm1989_vm1, %v2373_v12, %v2332_v16  ;;  %v2499_v16 = vld [vmem:[%s5031_s5] sm:$0xff]  ;;  %v2558_v39 = vld [vmem:[%s5031_s5 + $0x1d8] sm:$0xff]  ;;  %v2552_v41 = vld [vmem:[%s5031_s5 + $0x1a8] sm:$0xff] }
 0x4cf   :  { %2940 = vrot.lane.b32.xlu2 %v2939_v15, %s2982_s4  ;;  %v2949_v53 = vpack.i.bf16 %v2436_v14, %v4704_v54  ;;  %v2319_v60 = vrot.slane %v4609_v34, 4  ;;  %v2380_v9 = vperm.slane %v2374_v50, %v4523_v17  ;;  %v2398_v43 = vsel %vm1989_vm1, %v2397_v27, %v2356_v19  ;;  %v2517_v19 = vld [vmem:[%s5031_s5 + $0x90] sm:$0xff]  ;;  %2620 = vmatpush.msrb.mxu1 %v2533_v52  ;;  %v2550_v33 = vld [vmem:[%s5031_s5 + $0x198] sm:$0xff]  ;;  %v2531_v12 = vld [vmem:[%s5031_s5 + $0x100] sm:$0xff] }
 0x4d0   :  { %2945 = vrot.lane.b32.xlu0 %v2944_v58, %s2978_s27  ;;  %v2425_v57 = vrot.slane %v2408_v45, 4  ;;  %v2404_v25 = vperm.slane %v2398_v43, %v4523_v17  ;;  %v2427_v1 = vrot.slane %v2384_v3, 4  ;;  %v4870_v49 = vsel %vm1989_vm1, %v2429_v46, %v2392_v28  ;;  %v2560_v28 = vld [vmem:[%s5031_s5 + $0x1e8] sm:$0xff]  ;;  %v2549_v47 = vld [vmem:[%s5031_s5 + $0x190] sm:$0xff]  ;;  %v2547_v62 = vld [vmem:[%s5031_s5 + $0x180] sm:$0xff] }
 0x4d1   :  { %2950 = vrot.lane.b32.xlu1 %v2949_v53, %s2979_s3  ;;  %v2321_v4 = vrot.slane %v4731_v10, 4  ;;  %v2423_v54 = vrot.slane %v2380_v9, 4  ;;  %v2323_v34 = vrot.slane %v4728_v56, 4  ;;  %v2320_v26 = vsel %vm1989_vm1, %v4612_v21, %v2319_v60  ;;  %v2501_v21 = vld [vmem:[%s5031_s5 + $0x10] sm:$0xff]  ;;  %2621 = vmatpush.msrb.mxu1 %v2532_v42  ;;  %v2548_v27 = vld [vmem:[%s5031_s5 + $0x188] sm:$0xff]  ;;  %v2655_v46 = vld [vmem:[%s5033_s7 + $0x38] sm:$0xff] }
 0x4d2   :  { %v2421_v6 = vrot.slane %v2404_v25, 4  ;;  %v2426_v51 = vsel %vm1989_vm1, %v2425_v57, %v2384_v3  ;;  %v2428_v17 = vsel %vm1989_vm1, %v2408_v45, %v2427_v1  ;;  %2580 = vmatpush.msra.mxu3 %v2501_v21  ;;  %v2649_v21 = vld [vmem:[%s5033_s7 + $0x8] sm:$0xff]  ;;  %v2648_v32 = vld [vmem:[%s5033_s7] sm:$0xff] }
 0x4d3   :  { %v2424_v29 = vsel %vm1989_vm1, %v2404_v25, %v2423_v54  ;;  %v2322_v2 = vsel %vm1989_vm1, %v2321_v4, %v4728_v56  ;;  %v2324_v13 = vsel %vm1989_vm1, %v4731_v10, %v2323_v34  ;;  %v2500_v56 = vld [vmem:[%s5031_s5 + $0x8] sm:$0xff]  ;;  %v2518_v10 = vld [vmem:[%s5031_s5 + $0x98] sm:$0xff]  ;;  %2622 = vmatpush.msrb.mxu1 %v2531_v12 }
 0x4d4   :  { %v4881_v37 = vsel %vm1989_vm1, %v2421_v6, %v2380_v9  ;;  %v2954_v55 = vpack.i.bf16 %v2424_v29, %v2320_v26  ;;  %v2959_v24 = vpack.i.bf16 %v2426_v51, %v2322_v2  ;;  %v2964_v7 = vpack.i.bf16 %v2428_v17, %v2324_v13  ;;  %2599 = vmatpush.msra.mxu0 %v2518_v10  ;;  %v2651_v13 = vld [vmem:[%s5033_s7 + $0x18] sm:$0xff] }
 0x4d5   :  { %2581 = vmatpush.msra.mxu3 %v2500_v56  ;;  %v2971_v56 = vld [vmem:[%s5032_s6] ss:$0 sm:$0xff] }
 0x4d6   :  { %2600 = vmatpush.msra.mxu0 %v2517_v19 }
 0x4d7   :  { %2955 = vrot.lane.b32.xlu2 %v2954_v55, %s2982_s4  ;;  %2582 = vmatpush.msra.mxu3 %v2499_v16  ;;  %v2653_v55 = vld [vmem:[%s5033_s7 + $0x28] sm:$0xff] }
 0x4d8   :  { %2960 = vrot.lane.b32.xlu0 %v2959_v24, %s2978_s27  ;;  %2601 = vmatpush.msra.mxu0 %v2516_v59  ;;  %v2652_v24 = vld [vmem:[%s5033_s7 + $0x20] sm:$0xff] }
 0x4d9   :  { %2965 = vrot.lane.b32.xlu1 %v2964_v7, %s2979_s3  ;;  %2627 = vmatpush.msrb.mxu3 %v2562_v11  ;;  %v2650_v7 = vld [vmem:[%s5033_s7 + $0x10] sm:$0xff]  ;;  %v2972_v59 = vld [vmem:[%s5034_s8] ss:$0 sm:$0xff] }
 0x4da   :  { %2602 = vmatpush.msra.mxu0 %v2515_v48 }
 0x4db   :  { %2628 = vmatpush.msrb.mxu3 %v2561_v22 }
 0x4dc   :  { %2671 = vmatpush.msrb.mxu0 %v2655_v46 }
 0x4dd   :  { %2629 = vmatpush.msrb.mxu3 %v2560_v28 }
 0x4df   :  { %2630 = vmatpush.msrb.mxu3 %v2559_v63 }
 0x4e1   :  { %2631 = vmatpush.msrb.mxu3 %v2558_v39 }
 0x4e3   :  { %2632 = vmatpush.msrb.mxu3 %v2557_v40 }
 0x4e5   :  { %2633 = vmatpush.msrb.mxu3 %v2556_v30 }
 0x4e7   :  { %2634 = vmatpush.msrb.mxu3 %v2555_v20 }
 0x4e9   :  { %2635 = vmatpush.msrb.mxu3 %v2554_v61 }
 0x4eb   :  { %2636 = vmatpush.msrb.mxu3 %v2553_v38 }
 0x4ed   :  { %2637 = vmatpush.msrb.mxu3 %v2552_v41 }
 0x4ef   :  { %2638 = vmatpush.msrb.mxu3 %v2551_v36 }
 0x4f1   :  { %2639 = vmatpush.msrb.mxu3 %v2550_v33 }
 0x4f3   :  { %2640 = vmatpush.msrb.mxu3 %v2549_v47 }
 0x4f5   :  { %2641 = vmatpush.msrb.mxu3 %v2548_v27 }
 0x4f7   :  { %2642 = vmatpush.msrb.mxu3 %v2547_v62 }
 0x529   :  { %v2941_v23 = vpop.permute.xlu2 %2940 }
 0x52a   :  { %v2942_v8 = vunpack.i.l.bf16 %v2941_v23  ;;  %v2943_v45 = vunpack.i.h.bf16 %v2941_v23 }
 0x52c   :  { %v2486_v3 = vsel %vm2485_vm2, %v4602_v0, %v2942_v8  ;;  %v2496_v43 = vsel %vm2485_vm2, %v4870_v49, %v2943_v45 }
 0x531   :  { %v2956_v31 = vpop.permute.xlu2 %2955 }
 0x532   :  { %v2957_v53 = vunpack.i.l.bf16 %v2956_v31  ;;  %v2958_v60 = vunpack.i.h.bf16 %v2956_v31 }
 0x534   :  { %v2490_v25 = vsel %vm2485_vm2, %v4617_v5, %v2957_v53  ;;  %v2493_v6 = vsel %vm2485_vm2, %v4881_v37, %v2958_v60  ;;  %v2654_v37 = vld [vmem:[%s5033_s7 + $0x30] sm:$0xff] }
 0x535   :  { %2672 = vmatpush.msrb.mxu0 %v2654_v37 }
 0x537   :  { %2673 = vmatpush.msrb.mxu0 %v2653_v55 }
 0x539   :  { %2674 = vmatpush.msrb.mxu0 %v2652_v24 }
 0x53b   :  { %2675 = vmatpush.msrb.mxu0 %v2651_v13 }
 0x53d   :  { %2676 = vmatpush.msrb.mxu0 %v2650_v7 }
 0x53f   :  { %2677 = vmatpush.msrb.mxu0 %v2649_v21 }
 0x541   :  { %2678 = vmatpush.msrb.mxu0 %v2648_v32 }
 0x542   :  { %v2946_v35 = vpop.permute.xlu0 %2945 }
 0x543   :  { %v2947_v44 = vunpack.i.l.bf16 %v2946_v35  ;;  %v2951_v15 = vpop.permute.xlu1 %2950  ;;  %v2948_v9 = vunpack.i.h.bf16 %v2946_v35 }
 0x544   :  { %v2952_v58 = vunpack.i.l.bf16 %v2951_v15  ;;  %v2953_v1 = vunpack.i.h.bf16 %v2951_v15 }
 0x545   :  { %v2487_v14 = vsel %vm84_vm0, %v2486_v3, %v2947_v44  ;;  %v2497_v34 = vsel %vm84_vm0, %v2496_v43, %v2948_v9 }
 0x546   :  { %v2489_v50 = vsel %vm2488_vm3, %v2487_v14, %v2952_v58  ;;  %v2498_v5 = vsel %vm2488_vm3, %v2497_v34, %v2953_v1 }
 0x547   :  { %2583 = vmatmul.f32.vlgmr.msra.gmra.mxu3 %v2489_v50 }
 0x54a   :  { %v2961_v57 = vpop.permute.xlu0 %2960 }
 0x54b   :  { %v2963_v0 = vunpack.i.h.bf16 %v2961_v57  ;;  %v2962_v4 = vunpack.i.l.bf16 %v2961_v57  ;;  %v2966_v54 = vpop.permute.xlu1 %2965 }
 0x54c   :  { %v2968_v51 = vunpack.i.h.bf16 %v2966_v54  ;;  %v2967_v29 = vunpack.i.l.bf16 %v2966_v54 }
 0x54d   :  { %v2491_v26 = vsel %vm84_vm0, %v2490_v25, %v2962_v4  ;;  %v2494_v17 = vsel %vm84_vm0, %v2493_v6, %v2963_v0 }
 0x54e   :  { %v2492_v49 = vsel %vm2488_vm3, %v2491_v26, %v2967_v29  ;;  %v2495_v2 = vsel %vm2488_vm3, %v2494_v17, %v2968_v51 }
 0x54f   :  { %2603 = vmatmul.f32.vlgmr.msra.gmra.mxu0 %v2492_v49  ;;  %2623 = vmatmul.f32.vlgmr.msrb.gmra.mxu1 %v2495_v2 }
 0x550   :  { %2643 = vmatmul.f32.vlgmr.msrb.gmra.mxu3 %v2498_v5 }
 0x5ca   :  { %v2584_v10 = vpop.f32.mrf.mxu3 }
 0x5cb   :  { %v2585_v16 = vadd.f32 %v2971_v56, %v2584_v10 }
 0x5cc   :  { %v2604_v11 = vpop.f32.mrf.mxu0  ;;  %v2624_v18 = vpop.f32.mrf.mxu1 }
 0x5cd   :  { %v2605_v22 = vadd.f32 %v2604_v11, %v2585_v16 }
 0x5cf   :  { %v2625_v28 = vadd.f32 %v2624_v18, %v2605_v22 }
 0x5d3   :  { %v2644_v19 = vpop.f32.mrf.mxu3 }
 0x5d4   :  { %v2645_v63 = vadd.f32 %v2644_v19, %v2625_v28 }
 0x5d6   :  { %v2647_v52 = vmax.f32 %v2645_v63, 0.0 }
 0x5d8   :  { %2917 = vmatmul.msk.f32.vlgmr.msrb.gmra.mxu0 %vm84_vm0, %v2647_v52 }
 0x655   :  { %v2680_v39 = vpop.f32.mrf.mxu0 }
 0x656   :  { %v2681_v40 = vadd.f32 %v2972_v59, %v2680_v39 }
 0x658   :  { %v2684_v30 = vsel %vm2683_vm4, %v2681_v40, -inf }
 0x659   :  { %2685 = vmax.xlane.f32.xlu2 %v2684_v30 }
 0x6cc   :  { %v2686_v20 = vpop.xlane.xlu2 %2685 }
 0x6cd   :  { %v2687_v61 = vsub.f32 %v2681_v40, %v2686_v20 }
 0x6cf   :  { %v2688_v38 = vmul.f32 1.442695, %v2687_v61 }
 0x6d1   :  { %2973 = vpow2.f32 %v2688_v38 }
 0x6d7   :  { %v2974_v42 = vpop.eup %2973 }
 0x6d8   :  { %v2690_v41 = vsel %vm2683_vm4, %v2974_v42, 0.0 }
 0x6d9   :  { %2691 = vadd.xlane.f32.xlu0 %v2690_v41 }
 0x74c   :  { %v2692_v36 = vpop.xlane.xlu0 %2691 }
 0x74d   :  { %2975 = vlog2.f32 %v2692_v36 }
 0x753   :  { %v2976_v48 = vpop.eup %2975 }
 0x754   :  { %v2694_v33 = vmul.f32 0.6931472, %v2976_v48 }
 0x756   :  { %v2695_v47 = vsub.f32 %v2687_v61, %v2694_v33 }
 0x758   :  { %2696 = vst.msk [vmem:[%s5035_s9] sm:$0xff] %vm2683_vm4, %v2695_v47 }

</bundles_post_ra>
